<compile_context>
chip_gen: v6e
topology: v6e:2x2x1
jax: 0.10.0
libtpu: 0.0.40
codegen_flags: <defaults>
</compile_context>

<pallas_src>
import numpy as np
import jax
import jax.numpy as jnp
from jax.experimental import pallas as pl
from jax.experimental.pallas import tpu as pltpu


def sum_dis_kernel(dist_ref, feat_ref, z_ref):
    # dist_ref : [tn, 3]     distances of the 3 mailbox messages
    # feat_ref : [tn, 3*D]   the 3 gathered neighbor features, concatenated on lanes
    # z_ref    : [tn, D]     normalised weighted sum
    D = z_ref.shape[1]

    d0 = dist_ref[:, 0:1].astype(jnp.float32)
    d1 = dist_ref[:, 1:2].astype(jnp.float32)
    d2 = dist_ref[:, 2:3].astype(jnp.float32)
    inv_norm = 1.0 / (d0 + d1 + d2)           # [tn, 1]
    w0 = d0 * inv_norm
    w1 = d1 * inv_norm
    w2 = d2 * inv_norm

    # Static slices of the feature block; all math in f32 on the VPU.
    z = (w0 * feat_ref[:, 0:D].astype(jnp.float32)
         + w1 * feat_ref[:, D:2 * D].astype(jnp.float32)
         + w2 * feat_ref[:, 2 * D:3 * D].astype(jnp.float32))
    z_ref[...] = z.astype(z_ref.dtype)


def _pick_tile(N, tn_max=1024):
    """Row tile: >= ~8 grid steps for megacore/pipeline overlap when N is large
    enough, rounded to a multiple of 256 rows, capped so double-buffered blocks
    (~5 MiB at tn=1024, D=128, f32) stay well under every generation's scoped
    VMEM default."""
    tn = pl.cdiv(N, 8)
    tn = ((tn + 255) // 256) * 256
    return max(256, min(tn, tn_max))


def sum_dis_pallas(distance, interpolated_feature, *, tn=None):
    """distance: [N, 3] positive weights; interpolated_feature: [N, 3, D] -> z: [N, D]."""
    N, K = distance.shape
    N2, K2, D = interpolated_feature.shape
    assert K == 3 and K2 == 3 and N2 == N

    out_dtype = interpolated_feature.dtype
    if tn is None:
        tn = _pick_tile(N)

    # Free contiguous reshape (no data movement): [N, 3, D] -> [N, 3*D].
    feat2d = interpolated_feature.reshape(N, 3 * D)

    # Ragged grid: only the tiny distance array is padded (with 1.0, so the
    # normalisation of tail rows stays finite).  The feature mailbox and the
    # output are left at N rows -- OOB feature reads in the last tile feed only
    # output rows whose stores Pallas clips.
    num_tiles = pl.cdiv(N, tn)
    n_pad = num_tiles * tn
    dist = distance
    if n_pad != N:
        dist = jnp.pad(dist, ((0, n_pad - N), (0, 0)), constant_values=1.0)

    return pl.pallas_call(
        sum_dis_kernel,
        out_shape=jax.ShapeDtypeStruct((N, D), out_dtype),
        grid_spec=pltpu.PrefetchScalarGridSpec(
            num_scalar_prefetch=0,
            grid=(num_tiles,),
            in_specs=[
                pl.BlockSpec((tn, 3), lambda i: (i, 0)),        # distances tile
                pl.BlockSpec((tn, 3 * D), lambda i: (i, 0)),    # gathered features tile
            ],
            out_specs=pl.BlockSpec((tn, D), lambda i: (i, 0)),
        ),
        # Pure per-row VPU work, no cross-step state -> shard grid across TCs.
        compiler_params=pltpu.CompilerParams(
            dimension_semantics=("parallel",)),
    )(dist, feat2d)


def _reference(distance, feat):
    norm = jnp.sum(distance, axis=1)
    w = distance / jnp.tile(norm.reshape(-1, 1), (1, 3))
    return jnp.sum(w[:, :, None] * feat, axis=1)


if __name__ == "__main__":
    # N deliberately not a multiple of the tile size to exercise the ragged
    # last block; D = 128 keeps all blocks lane-dense.
    N, K, D = 1000, 3, 128

    key = jax.random.PRNGKey(0)
    k1, k2 = jax.random.split(key)

    # mailbox['distance']: positive inverse-square-distance weights, [N, 3]
    d2 = jax.random.uniform(k1, (N, K), jnp.float32, minval=0.01, maxval=4.0)
    distance = 1.0 / (d2 + 1e-6)
    # mailbox['interpolated_feature']: gathered neighbor features, [N, 3, D]
    feat = jax.random.normal(k2, (N, K, D), jnp.float32)

    # f32 path
    z = sum_dis_pallas(distance, feat)
    z = jax.block_until_ready(z)
    ref = _reference(distance, feat)
    assert z.shape == (N, D)
    np.testing.assert_allclose(np.asarray(z), np.asarray(ref), rtol=1e-5, atol=1e-5)

    # bf16 mailbox path (halves HBM traffic; math still done in f32 in-kernel).
    feat_bf16 = feat.astype(jnp.bfloat16)
    z_bf16 = jax.block_until_ready(sum_dis_pallas(distance, feat_bf16))
    ref_bf16 = _reference(distance, feat_bf16.astype(jnp.float32))
    np.testing.assert_allclose(np.asarray(z_bf16, dtype=np.float32),
                               np.asarray(ref_bf16), rtol=5e-2, atol=5e-2)

    print("KERNEL_OK")
</pallas_src>

<mosaic_0001>
module attributes {stable_mosaic.version = 11 : i64} {
  func.func @sum_dis_kernel(%arg0: i32, %arg1: memref<256x3xf32, #tpu.memory_space<vmem>>, %arg2: memref<256x384xf32, #tpu.memory_space<vmem>>, %arg3: memref<256x128xf32, #tpu.memory_space<vmem>>) attributes {dimension_semantics = [#tpu.dimension_semantics<parallel>], iteration_bounds = array<i64: 4>, scalar_prefetch = 0 : i64, scratch_operands = 0 : i64, tpu.core_type = #tpu.core_type<tc>, window_params = [{transform_indices = @transform_0, window_bounds = array<i64: 256, 3>}, {transform_indices = @transform_1, window_bounds = array<i64: 256, 384>}, {transform_indices = @transform_2, window_bounds = array<i64: 256, 128>}]} {
    %c0 = arith.constant 0 : index
    %c0_0 = arith.constant 0 : index
    %0 = vector.load %arg1[%c0, %c0_0] : memref<256x3xf32, #tpu.memory_space<vmem>>, vector<256x1xf32>
    %c0_1 = arith.constant 0 : index
    %c1 = arith.constant 1 : index
    %1 = vector.load %arg1[%c0_1, %c1] : memref<256x3xf32, #tpu.memory_space<vmem>>, vector<256x1xf32>
    %c0_2 = arith.constant 0 : index
    %c2 = arith.constant 2 : index
    %2 = vector.load %arg1[%c0_2, %c2] : memref<256x3xf32, #tpu.memory_space<vmem>>, vector<256x1xf32>
    %3 = arith.addf %0, %1 : vector<256x1xf32>
    %4 = arith.addf %3, %2 : vector<256x1xf32>
    %cst = arith.constant 1.000000e+00 : f32
    %5 = vector.broadcast %cst : f32 to vector<256x1xf32>
    %6 = arith.divf %5, %4 : vector<256x1xf32>
    %7 = arith.mulf %0, %6 : vector<256x1xf32>
    %8 = arith.mulf %1, %6 : vector<256x1xf32>
    %9 = arith.mulf %2, %6 : vector<256x1xf32>
    %c0_3 = arith.constant 0 : index
    %c0_4 = arith.constant 0 : index
    %10 = vector.load %arg2[%c0_3, %c0_4] : memref<256x384xf32, #tpu.memory_space<vmem>>, vector<256x128xf32>
    %11 = vector.broadcast %7 : vector<256x1xf32> to vector<256x128xf32>
    %12 = arith.mulf %11, %10 : vector<256x128xf32>
    %c0_5 = arith.constant 0 : index
    %c128 = arith.constant 128 : index
    %13 = vector.load %arg2[%c0_5, %c128] : memref<256x384xf32, #tpu.memory_space<vmem>>, vector<256x128xf32>
    %14 = vector.broadcast %8 : vector<256x1xf32> to vector<256x128xf32>
    %15 = arith.mulf %14, %13 : vector<256x128xf32>
    %16 = arith.addf %12, %15 : vector<256x128xf32>
    %c0_6 = arith.constant 0 : index
    %c256 = arith.constant 256 : index
    %17 = vector.load %arg2[%c0_6, %c256] : memref<256x384xf32, #tpu.memory_space<vmem>>, vector<256x128xf32>
    %18 = vector.broadcast %9 : vector<256x1xf32> to vector<256x128xf32>
    %19 = arith.mulf %18, %17 : vector<256x128xf32>
    %20 = arith.addf %16, %19 : vector<256x128xf32>
    %c0_7 = arith.constant 0 : index
    %c0_8 = arith.constant 0 : index
    %21 = vector.load %arg3[%c0_7, %c0_8] : memref<256x128xf32, #tpu.memory_space<vmem>>, vector<256x128xf32>
    tpu.vector_store %arg3[%c0_7, %c0_8], %20 {strides = array<i32>} : memref<256x128xf32, #tpu.memory_space<vmem>>, vector<256x128xf32>,
    return
  }
  func.func @transform_0(%arg0: i32) -> (i32, i32) {
    %c0_i32 = arith.constant 0 : i32
    %c0_i32_0 = arith.constant 0 : i32
    return %arg0, %c0_i32 : i32, i32
  }
  func.func @transform_1(%arg0: i32) -> (i32, i32) {
    %c0_i32 = arith.constant 0 : i32
    %c0_i32_0 = arith.constant 0 : i32
    return %arg0, %c0_i32 : i32, i32
  }
  func.func @transform_2(%arg0: i32) -> (i32, i32) {
    %c0_i32 = arith.constant 0 : i32
    %c0_i32_0 = arith.constant 0 : i32
    return %arg0, %c0_i32 : i32, i32
  }
}

</mosaic_0001>

<bundles_post_ra>
// kernel: tpu_custom_call.1
= control target key start
LH: loop header
LB: loop body
LE: loop exit
PB: predicated region body
PF: predicated region fallthrough
CT: control target
= control target key end

     0   :  { %7 = vsyncpa [#allocation3], 0  ;;  %s3414_s0 = inlined_call_operand.vmem [shape: f32[1024,3], index: 0, kind: input, shape index: {}]   ;;  %s3415_s1 = inlined_call_operand.hbm [shape: f32[1000,384], index: 1, kind: input, shape index: {}]   ;;  %s3416_s2 = inlined_call_operand.hbm [shape: f32[1000,128], index: 2, kind: output, shape index: {}]  }
   0x1   :  { %9 = vsyncpa [#allocation3 + $0x1], 0 }
   0x2   :  { %10 = vsyncpa [#allocation4], 0 }
   0x3   :  { %12 = vsyncpa [#allocation4 + $0x1], 0  ;;  %s2079_s9 = smov 0   ;;  %s2081_s10 = smov 0  }
   0x4   :  { %s2083_s11 = smov 0   ;;  %s2085_s12 = smov 0  }
   0x5 LB: > { %s2100_s13 = sadd.s32 4294967295, %s2049_s12   ;;  %s1780_s14 = sadd.s32 4294967294, %s2049_s12   ;;  %s2049_s12 = sphi %s2085_s12, %s3517_s12   ;;  %s2045_s11 = sphi %s2083_s11, %s3516_s11   ;;  %s2041_s10 = sphi %s2081_s10, %s3515_s10   ;;  %s2037_s9 = sphi %s2079_s9, %s3514_s9  }
   0x6   : > { %s2104_s15 = sadd.s32 1, %s2049_s12   ;;  %s51_s16 = sadd.s32 1, %s2045_s11 }
   0x7   : > { %s48_s17 = ssub.s32 %s2049_s12, %s2104_s15  ;;  %p58_p0 = scmp.ne.s32.totalorder %s2045_s11, %s2041_s10 }
   0x8   : > { %p49_p1 = scmp.eq.s32.totalorder %s48_s17, 0  ;;  %p59_p2 = scmp.eq.s32.totalorder %s2049_s12, 0 }
   0x9   : > { %p64_p3 = scmp.ne.s32.totalorder %s2041_s10, %s2037_s9  ;;  %p65_p4 = scmp.eq.s32.totalorder %s2100_s13, 0 }
   0xa   : > { %s2116_s18 = scalar_select %p49_p1, %s2045_s11, %s51_s16  }
   0xb   : > { %p60_p5 = por %p59_p2, %p58_p0  ;;  %p2118_p6 = por %p65_p4, %p64_p3 }
   0xc   : > { %p88_p7 = scmp.eq.s32.totalorder %s2100_s13, 3  ;;  %p94_p8 = scmp.eq.s32.totalorder %s1780_s14, 3 }
   0xd   : > { %p1782_p11 = scmp.ge.s32.totalorder %s2049_s12, 4 }
   0xe   : > { %p2123_p9 = por %p88_p7, %p58_p0  ;;  %p2127_p10 = por %p94_p8, %p64_p3 }
   0xf   : > { %110 = sbr.rel (%p1782_p11) target bundleno = 54 (0x36), region = 16 }
  0x10   : > { %s3436_s21 = scalar_select %p2127_p10, 1, 0 }
  0x14   : > { %122 = sbr.rel (!%p60_p5) target bundleno = 54 (0x36), region = 24  ;;  %s123_s22 = sand.u32 (%p60_p5), 1, %s2045_s11  }
  0x15   : > { %s1783_s23 = sshll.u32 (%p60_p5), %s2049_s12, 5  ;;  %s1804_s24 = smul.u32 (%p60_p5), 768, %s123_s22 }
  0x16   : > { %s129_s25 = ssub.s32 (%p60_p5), 125, %s1783_s23  ;;  %s2137_s28 = scalar_lea.sflag (%p60_p5), [#allocation3], %s123_s22 }
  0x17   : > { %p130_p12 = scmp.lt.s32.totalorder (%p60_p5), %s129_s25, 32  ;;  %s127_s29 = scalar_lea.vmem (%p60_p5), [#allocation2], %s1804_s24 }
  0x19   : > { %s3519_s25 = smov (!%p130_p12, %s129_s25), 32 }
  0x1a   : > { %s2134_s26 = smul.u32 384, %s3519_s25 }
  0x1c   : > { %s135_s27 = ssub.s32 12288, %s2134_s26 }
  0x1d   : > { %136 = vsyncadd %s2137_s28, %s135_s27  ;;  %p1786_p13 = scmp.ne.s32.totalorder %s2134_s26, 0  ;;  %s1805_s30 = smul.u32 12288, %s2049_s12 }
  0x1e   : > { %s142_s3 = sshll.u32 %s127_s29, 4  ;;  %s1963_s16 = scalar_lea.hbm %s3415_s1, 48000  ;;  %s2147_s3 = int_to_ptr.vmem [resolvable:$true] %s142_s3 }
  0x1f   : > { %s2145_s6 = scalar_lea.hbm %s3415_s1, %s1805_s30 }
  0x20   : > { %s1959_s7 = scalar_lea.hbm %s2145_s6, %s2134_s26  ;;  %p1964_p3 = scmp.lt.s32.totalorder %s2145_s6, %s3415_s1 }
  0x21   : > { %p1960_p0 = scmp.ne.s32.totalorder %s2145_s6, %s1959_s7  ;;  %p1965_p4 = scmp.lt.s32.totalorder %s1963_s16, %s1959_s7 }
  0x23   : > { %p1961_p1 = pnand %p1960_p0, %p1786_p13  ;;  %p1966_p5 = por %p1965_p4, %p1964_p3 }
  0x25   : > { %p1962_p2 = pneg %p1961_p1 }
  0x27   : > { %p1967_p7 = pnand %p1966_p5, %p1962_p2 }
  0x29   : > { %1970 = shalt.err (!%p1967_p7)
}
  0x2a   : > { %s1971_s23 = scalar_lea.vmem %s2147_s3, %s2134_s26  ;;  %s2051_s24 = smov [#allocation2]  }
  0x2b   : > { %p1972_p8 = scmp.ne.s32.totalorder %s2147_s3, %s1971_s23  ;;  %s1975_s25 = sshll.u32 %s2051_s24, 4  ;;  %s1976_s25 = int_to_ptr.vmem [resolvable:$false] %s1975_s25 }
  0x2c   : > { %s1977_s27 = scalar_lea.vmem %s1976_s25, 24576  ;;  %p1978_p0 = scmp.lt.s32.totalorder %s2147_s3, %s1976_s25 }
  0x2d   : > { %p1973_p11 = pnand %p1972_p8, %p1786_p13  ;;  %p1979_p1 = scmp.lt.s32.totalorder %s1977_s27, %s1971_s23 }
  0x2f   : > { %p1974_p12 = pneg %p1973_p11  ;;  %p1980_p10 = por %p1979_p1, %p1978_p0 }
  0x31   : > { %p1981_p3 = pnand %p1980_p10, %p1974_p12 }
  0x33   : > { %1984 = shalt.err (!%p1981_p3)
}
  0x34   : > { %s2052_s29 = smov 384   ;;  %s2053_s30 = smov 24  }
  0x35   : > { %148 = dma.hbm_to_vmem [thread:$0]  (%p1786_p13), %s2145_s6, %s2134_s26, %s2147_s3, %s2137_s28, %s2052_s29, %s2052_s29, %s2053_s30  }
  0x36 PF: > { %p1790_p2 = scmp.ge.s32.totalorder %s2049_s12, 1  ;;  %p150_p4 = scmp.lt.s32.totalorder %s2049_s12, 5 }
  0x38   : > { %p151_p5 = pnand %p1790_p2, %p150_p4 }
  0x3a   : > { %154 = sbr.rel (%p151_p5) target bundleno = 749 (0x2ed), region = 28 }
  0x3f   : > { %s2176_s4 = sand.u32 1, %s2041_s10  }
  0x40   : > { %s1806_s5 = smul.u32 768, %s2176_s4  ;;  %s157_s7 = scalar_lea.sflag [#allocation3], %s2176_s4 }
  0x42   : > { %s2180_s8 = scalar_lea.vmem [#allocation2], %s1806_s5 }
  0x43   : > { %2028 = dma.done.wait (%p2118_p6), %s157_s7, 12288  }
  0x44   : > { %2030 = vsyncadd (%p2118_p6), %s157_s7, 4294955008  ;;  %s2187_s26 = sshll.u32 %s2100_s13, 5  ;;  %s2054_s19 = smov 127  }
  0x45   : > { %p187_p10 = scmp.lt.s32.totalorder %s2187_s26, 127  ;;  %s2055_s17 = smov 126  }
  0x46   : > { %s2056_s22 = smov 1   ;;  %s2058_s23 = smov 2  }
  0x47   : > { %s188_s28 = scalar_select %p187_p10, %s2187_s26, 127 }
  0x48   : > { %s1791_s24 = sshll.u32 %s2176_s4, 8  ;;  %s1676_s27 = scalar_lea.sflag [#allocation4], %s2176_s4 }
  0x49   : > { %s1793_s3 = sshll.u32 %s188_s28, 3  ;;  %s3220_s25 = scalar_lea.vmem [#allocation5], %s1791_s24 }
  0x4a   : > { %s2194_s16 = scalar_lea.vmem %s3414_s0, %s1793_s3  ;;  %s1684_s29 = ssub.s32 (%p2123_p9), 125, %s2187_s26 }
  0x4b   : > { %v2197_v0 = vld [vmem:[%s2194_s16 + $0x10] sm:$0xff]  ;;  %v2200_v1 = vld [vmem:[%s2194_s16] sm:$0xff]  ;;  %v2207_v2 = vld [vmem:[%s2194_s16 + $0x18] sm:$0xff]  ;;  %p1685_p6 = scmp.lt.s32.totalorder (%p2123_p9), %s1684_s29, 32 }
  0x4c   : > { %3437 = vst [vmem:[#allocation8_spill] sm:$0xff] %v2200_v1  ;;  %271 = vrot.lane.b32.xlu1 %v2197_v0, %s2054_s19  ;;  %267 = vrot.lane.b32.xlu0 %v2200_v1, %s2054_s19  ;;  %v2210_v3 = vld [vmem:[%s2194_s16 + $0x8] sm:$0xff]  ;;  %v2220_v5 = vld [vmem:[%s2194_s16 + $0x20] sm:$0xff] }
  0x4d   : > { %v2217_v4 = vld [vmem:[%s2194_s16 + $0x28] sm:$0xff]  ;;  %v2227_v6 = vld [vmem:[%s2194_s16 + $0x38] sm:$0xff]  ;;  %v2230_v7 = vld [vmem:[%s2194_s16 + $0x30] sm:$0xff] }
  0x4e   : > { %v2237_v8 = vld [vmem:[%s2194_s16 + $0x48] sm:$0xff]  ;;  %v2240_v9 = vld [vmem:[%s2194_s16 + $0x40] sm:$0xff]  ;;  %v2247_v10 = vld [vmem:[%s2194_s16 + $0x58] sm:$0xff] }
  0x4f   : > { %v2250_v11 = vld [vmem:[%s2194_s16 + $0x50] sm:$0xff]  ;;  %v2257_v12 = vld [vmem:[%s2194_s16 + $0x68] sm:$0xff]  ;;  %v2260_v13 = vld [vmem:[%s2194_s16 + $0x60] sm:$0xff] }
  0x50   : > { %273 = vrot.lane.b32.xlu1 %v2207_v2, %s2054_s19  ;;  %269 = vrot.lane.b32.xlu0 %v2210_v3, %s2054_s19  ;;  %v2267_v14 = vld [vmem:[%s2194_s16 + $0x78] sm:$0xff]  ;;  %v2270_v15 = vld [vmem:[%s2194_s16 + $0x70] sm:$0xff] }
  0x51   : > { %v2277_v16 = vld [vmem:[%s2194_s16 + $0x88] sm:$0xff]  ;;  %v2280_v17 = vld [vmem:[%s2194_s16 + $0x80] sm:$0xff]  ;;  %v2287_v18 = vld [vmem:[%s2194_s16 + $0x98] sm:$0xff] }
  0x52   : > { %v2290_v19 = vld [vmem:[%s2194_s16 + $0x90] sm:$0xff]  ;;  %v2297_v20 = vld [vmem:[%s2194_s16 + $0xa8] sm:$0xff]  ;;  %v2300_v21 = vld [vmem:[%s2194_s16 + $0xa0] sm:$0xff] }
  0x53   : > { %v2307_v22 = vld [vmem:[%s2194_s16 + $0xb8] sm:$0xff]  ;;  %v2310_v23 = vld [vmem:[%s2194_s16 + $0xb0] sm:$0xff]  ;;  %v2317_v24 = vld [vmem:[%s2194_s16 + $0xc8] sm:$0xff] }
  0x54   : > { %277 = vrot.lane.b32.xlu1 %v2217_v4, %s2054_s19  ;;  %275 = vrot.lane.b32.xlu0 %v2220_v5, %s2054_s19  ;;  %v2320_v25 = vld [vmem:[%s2194_s16 + $0xc0] sm:$0xff]  ;;  %v2327_v26 = vld [vmem:[%s2194_s16 + $0xd8] sm:$0xff] }
  0x55   : > { %3438 = vst [vmem:[#allocation9_spill] sm:$0xff] %v2327_v26  ;;  %v2330_v27 = vld [vmem:[%s2194_s16 + $0xd0] sm:$0xff]  ;;  %v2337_v28 = vld [vmem:[%s2194_s16 + $0xe8] sm:$0xff]  ;;  %v2340_v29 = vld [vmem:[%s2194_s16 + $0xe0] sm:$0xff] }
  0x56   : > { %3439 = vst [vmem:[#allocation10_spill] sm:$0xff] %v2330_v27  ;;  %3440 = vst [vmem:[#allocation11_spill] sm:$0xff] %v2337_v28  ;;  %v2347_v30 = vld [vmem:[%s2194_s16 + $0xf8] sm:$0xff]  ;;  %v2350_v31 = vld [vmem:[%s2194_s16 + $0xf0] sm:$0xff] }
  0x57   : > { %3441 = vst [vmem:[#allocation12_spill] sm:$0xff] %v2340_v29  ;;  %3442 = vst [vmem:[#allocation13_spill] sm:$0xff] %v2347_v30 }
  0x58   : > { %281 = vrot.lane.b32.xlu1 %v2227_v6, %s2054_s19  ;;  %279 = vrot.lane.b32.xlu0 %v2230_v7, %s2054_s19  ;;  %3443 = vst [vmem:[#allocation14_spill] sm:$0xff] %v2350_v31 }
  0x5c   : > { %285 = vrot.lane.b32.xlu1 %v2237_v8, %s2054_s19  ;;  %283 = vrot.lane.b32.xlu0 %v2240_v9, %s2054_s19 }
  0x60   : > { %289 = vrot.lane.b32.xlu1 %v2247_v10, %s2054_s19  ;;  %287 = vrot.lane.b32.xlu0 %v2250_v11, %s2054_s19 }
  0x64   : > { %293 = vrot.lane.b32.xlu1 %v2257_v12, %s2054_s19  ;;  %291 = vrot.lane.b32.xlu0 %v2260_v13, %s2054_s19 }
  0x68   : > { %297 = vrot.lane.b32.xlu1 %v2267_v14, %s2054_s19  ;;  %295 = vrot.lane.b32.xlu0 %v2270_v15, %s2054_s19 }
  0x6c   : > { %301 = vrot.lane.b32.xlu1 %v2277_v16, %s2054_s19  ;;  %299 = vrot.lane.b32.xlu0 %v2280_v17, %s2054_s19 }
  0x70   : > { %305 = vrot.lane.b32.xlu1 %v2287_v18, %s2054_s19  ;;  %303 = vrot.lane.b32.xlu0 %v2290_v19, %s2054_s19 }
  0x74   : > { %309 = vrot.lane.b32.xlu1 %v2297_v20, %s2054_s19  ;;  %307 = vrot.lane.b32.xlu0 %v2300_v21, %s2054_s19 }
  0x78   : > { %313 = vrot.lane.b32.xlu1 %v2307_v22, %s2054_s19  ;;  %311 = vrot.lane.b32.xlu0 %v2310_v23, %s2054_s19 }
  0x7c   : > { %317 = vrot.lane.b32.xlu1 %v2317_v24, %s2054_s19  ;;  %315 = vrot.lane.b32.xlu0 %v2320_v25, %s2054_s19 }
  0x80   : > { %321 = vrot.lane.b32.xlu1 %v2327_v26, %s2054_s19  ;;  %319 = vrot.lane.b32.xlu0 %v2330_v27, %s2054_s19 }
  0x84   : > { %325 = vrot.lane.b32.xlu1 %v2337_v28, %s2054_s19  ;;  %323 = vrot.lane.b32.xlu0 %v2340_v29, %s2054_s19 }
  0x88   : > { %329 = vrot.lane.b32.xlu1 %v2347_v30, %s2054_s19  ;;  %327 = vrot.lane.b32.xlu0 %v2350_v31, %s2054_s19 }
  0x8c   : > { %397 = vrot.lane.b32.xlu1 %v2210_v3, %s2055_s17  ;;  %395 = vrot.lane.b32.xlu0 %v2200_v1, %s2055_s17 }
  0x90   : > { %401 = vrot.lane.b32.xlu1 %v2207_v2, %s2055_s17  ;;  %399 = vrot.lane.b32.xlu0 %v2197_v0, %s2055_s17 }
  0x94   : > { %405 = vrot.lane.b32.xlu1 %v2217_v4, %s2055_s17  ;;  %403 = vrot.lane.b32.xlu0 %v2220_v5, %s2055_s17 }
  0x98   : > { %409 = vrot.lane.b32.xlu1 %v2227_v6, %s2055_s17  ;;  %407 = vrot.lane.b32.xlu0 %v2230_v7, %s2055_s17 }
  0x9c   : > { %413 = vrot.lane.b32.xlu1 %v2237_v8, %s2055_s17  ;;  %411 = vrot.lane.b32.xlu0 %v2240_v9, %s2055_s17 }
  0xa0   : > { %417 = vrot.lane.b32.xlu1 %v2247_v10, %s2055_s17  ;;  %415 = vrot.lane.b32.xlu0 %v2250_v11, %s2055_s17 }
  0xa4   : > { %421 = vrot.lane.b32.xlu1 %v2257_v12, %s2055_s17  ;;  %419 = vrot.lane.b32.xlu0 %v2260_v13, %s2055_s17 }
  0xa8   : > { %425 = vrot.lane.b32.xlu1 %v2267_v14, %s2055_s17  ;;  %423 = vrot.lane.b32.xlu0 %v2270_v15, %s2055_s17 }
  0xac   : > { %429 = vrot.lane.b32.xlu1 %v2277_v16, %s2055_s17  ;;  %427 = vrot.lane.b32.xlu0 %v2280_v17, %s2055_s17 }
  0xb0   : > { %433 = vrot.lane.b32.xlu1 %v2287_v18, %s2055_s17  ;;  %431 = vrot.lane.b32.xlu0 %v2290_v19, %s2055_s17 }
  0xb4   : > { %437 = vrot.lane.b32.xlu1 %v2297_v20, %s2055_s17  ;;  %435 = vrot.lane.b32.xlu0 %v2300_v21, %s2055_s17 }
  0xb8   : > { %441 = vrot.lane.b32.xlu1 %v2307_v22, %s2055_s17  ;;  %439 = vrot.lane.b32.xlu0 %v2310_v23, %s2055_s17 }
  0xbc   : > { %445 = vrot.lane.b32.xlu1 %v2317_v24, %s2055_s17  ;;  %443 = vrot.lane.b32.xlu0 %v2320_v25, %s2055_s17 }
  0xbe   : > { %v272_v32 = vpop.permute.xlu1 %271  ;;  %v268_v33 = vpop.permute.xlu0 %267 }
  0xc0   : > { %449 = vrot.lane.b32.xlu1 %v2327_v26, %s2055_s17  ;;  %447 = vrot.lane.b32.xlu0 %v2330_v27, %s2055_s17 }
  0xc2   : > { %v274_v34 = vpop.permute.xlu1 %273  ;;  %v270_v35 = vpop.permute.xlu0 %269 }
  0xc4   : > { %453 = vrot.lane.b32.xlu1 %v2337_v28, %s2055_s17  ;;  %451 = vrot.lane.b32.xlu0 %v2340_v29, %s2055_s17 }
  0xc6   : > { %v278_v36 = vpop.permute.xlu1 %277  ;;  %v276_v37 = vpop.permute.xlu0 %275 }
  0xc8   : > { %457 = vrot.lane.b32.xlu1 %v2347_v30, %s2055_s17  ;;  %455 = vrot.lane.b32.xlu0 %v2350_v31, %s2055_s17  ;;  %v363_v31 = vadd.f32 %v268_v33, %v2200_v1  ;;  %v364_v30 = vadd.f32 %v270_v35, %v2210_v3  ;;  %v367_v33 = vadd.f32 %v276_v37, %v2220_v5 }
  0xca   : > { %v282_v38 = vpop.permute.xlu1 %281  ;;  %v280_v39 = vpop.permute.xlu0 %279 }
  0xce   : > { %v286_v40 = vpop.permute.xlu1 %285  ;;  %v284_v41 = vpop.permute.xlu0 %283 }
  0xcf   : > { %v371_v37 = vadd.f32 %v284_v41, %v2240_v9 }
  0xd2   : > { %v2420_v42 = vpop.permute.xlu1 %289  ;;  %v2422_v43 = vpop.permute.xlu0 %287 }
  0xd3   : > { %v373_v41 = vadd.f32 %v2422_v43, %v2250_v11 }
  0xd6   : > { %v2424_v44 = vpop.permute.xlu1 %293  ;;  %v2426_v45 = vpop.permute.xlu0 %291 }
  0xd7   : > { %v375_v43 = vadd.f32 %v2426_v45, %v2260_v13 }
  0xda   : > { %v2428_v46 = vpop.permute.xlu1 %297  ;;  %v2430_v47 = vpop.permute.xlu0 %295 }
  0xdb   : > { %v377_v45 = vadd.f32 %v2430_v47, %v2270_v15 }
  0xde   : > { %v2432_v48 = vpop.permute.xlu1 %301  ;;  %v2434_v49 = vpop.permute.xlu0 %299 }
  0xdf   : > { %v379_v47 = vadd.f32 %v2434_v49, %v2280_v17 }
  0xe2   : > { %v2436_v50 = vpop.permute.xlu1 %305  ;;  %v2438_v51 = vpop.permute.xlu0 %303 }
  0xe3   : > { %v381_v49 = vadd.f32 %v2438_v51, %v2290_v19 }
  0xe6   : > { %v2440_v52 = vpop.permute.xlu1 %309  ;;  %v2442_v53 = vpop.permute.xlu0 %307 }
  0xe7   : > { %v383_v51 = vadd.f32 %v2442_v53, %v2300_v21 }
  0xea   : > { %v2444_v54 = vpop.permute.xlu1 %313  ;;  %v2446_v55 = vpop.permute.xlu0 %311 }
  0xeb   : > { %v385_v53 = vadd.f32 %v2446_v55, %v2310_v23 }
  0xee   : > { %v2448_v56 = vpop.permute.xlu1 %317  ;;  %v2450_v57 = vpop.permute.xlu0 %315 }
  0xef   : > { %3444 = vst [vmem:[#allocation15_spill] sm:$0xff] %v2450_v57 }
  0xf2   : > { %v2452_v58 = vpop.permute.xlu1 %321  ;;  %v2454_v59 = vpop.permute.xlu0 %319 }
  0xf3   : > { %3445 = vst [vmem:[#allocation16_spill] sm:$0xff] %v2452_v58  ;;  %3446 = vst [vmem:[#allocation17_spill] sm:$0xff] %v2454_v59  ;;  %v365_v58 = vadd.f32 %v272_v32, %v2197_v0  ;;  %v366_v59 = vadd.f32 %v274_v34, %v2207_v2 }
  0xf6   : > { %v2456_v60 = vpop.permute.xlu1 %325  ;;  %v2458_v61 = vpop.permute.xlu0 %323  ;;  %v3451_v55 = vld [vmem:[#allocation15_spill] sm:$0xff] }
  0xf7   : > { %3447 = vst [vmem:[#allocation18_spill] sm:$0xff] %v2456_v60  ;;  %3448 = vst [vmem:[#allocation19_spill] sm:$0xff] %v2458_v61 }
  0xfa   : > { %v2460_v62 = vpop.permute.xlu1 %329  ;;  %v2462_v63 = vpop.permute.xlu0 %327 }
  0xfb   : > { %3449 = vst [vmem:[#allocation20_spill] sm:$0xff] %v2460_v62  ;;  %3450 = vst [vmem:[#allocation21_spill] sm:$0xff] %v2462_v63  ;;  %v368_v63 = vadd.f32 %v278_v36, %v2217_v4  ;;  %v372_v36 = vadd.f32 %v286_v40, %v2237_v8  ;;  %v374_v40 = vadd.f32 %v2420_v42, %v2247_v10 }
  0xfc   : > { %v376_v42 = vadd.f32 %v2424_v44, %v2257_v12  ;;  %v378_v44 = vadd.f32 %v2428_v46, %v2267_v14  ;;  %v380_v46 = vadd.f32 %v2432_v48, %v2277_v16  ;;  %v382_v48 = vadd.f32 %v2436_v50, %v2287_v18 }
  0xfd   : > { %v384_v50 = vadd.f32 %v2440_v52, %v2297_v20  ;;  %v386_v52 = vadd.f32 %v2444_v54, %v2307_v22  ;;  %v388_v54 = vadd.f32 %v2448_v56, %v2317_v24  ;;  %v3452_v56 = vld [vmem:[#allocation9_spill] sm:$0xff] }
  0xfe   : > { %v398_v29 = vpop.permute.xlu1 %397  ;;  %v396_v28 = vpop.permute.xlu0 %395 }
  0xff   : > { %v492_v27 = vadd.f32 %v398_v29, %v364_v30  ;;  %v491_v26 = vadd.f32 %v396_v28, %v363_v31  ;;  %v370_v30 = vadd.f32 %v282_v38, %v2227_v6  ;;  %v369_v31 = vadd.f32 %v280_v39, %v2230_v7 }
 0x101   : > { %1863 = vrcp.f32 %v492_v27 }
 0x102   : > { %1865 = vrcp.f32 %v491_v26  ;;  %v402_v60 = vpop.permute.xlu1 %401  ;;  %v400_v61 = vpop.permute.xlu0 %399 }
 0x103   : > { %v494_v57 = vadd.f32 %v402_v60, %v366_v59  ;;  %v493_v62 = vadd.f32 %v400_v61, %v365_v58  ;;  %v2057_v60 = vmov 0  }
 0x104   : > { %1857 = vset.pattern.permute.xlu0 %v2057_v60  ;;  %1858 = vset.pattern.permute.xlu1 %v2057_v60 }
 0x105   : > { %1867 = vrcp.f32 %v494_v57 }
 0x106   : > { %1869 = vrcp.f32 %v493_v62  ;;  %v406_v35 = vpop.permute.xlu1 %405  ;;  %v404_v1 = vpop.permute.xlu0 %403 }
 0x107   : > { %v496_v29 = vadd.f32 %v406_v35, %v368_v63  ;;  %v495_v28 = vadd.f32 %v404_v1, %v367_v33 }
 0x109   : > { %1871 = vrcp.f32 %v496_v29 }
 0x10a   : > { %1873 = vrcp.f32 %v495_v28  ;;  %v410_v26 = vpop.permute.xlu1 %409  ;;  %v408_v27 = vpop.permute.xlu0 %407 }
 0x10b   : > { %v498_v32 = vadd.f32 %v410_v26, %v370_v30  ;;  %v497_v34 = vadd.f32 %v408_v27, %v369_v31 }
 0x10d   : > { %1875 = vrcp.f32 %v498_v32 }
 0x10e   : > { %v2474_v57 = vpop.eup %1863  ;;  %1877 = vrcp.f32 %v497_v34  ;;  %v414_v58 = vpop.permute.xlu1 %413 }
 0x10f   : > { %v412_v1 = vpop.permute.xlu0 %411  ;;  %v2476_v59 = vpop.eup %1865  ;;  %v500_v38 = vadd.f32 %v414_v58, %v372_v36  ;;  %653 = vrot.lane.b32.xlu1 %v2474_v57, %s2056_s22 }
 0x110   : > { %v499_v39 = vadd.f32 %v412_v1, %v371_v37  ;;  %651 = vrot.lane.b32.xlu0 %v2476_v59, %s2056_s22 }
 0x111   : > { %1879 = vrcp.f32 %v500_v38 }
 0x112   : > { %v2486_v61 = vpop.eup %1867  ;;  %1881 = vrcp.f32 %v499_v39  ;;  %v418_v62 = vpop.permute.xlu1 %417 }
 0x113   : > { %v416_v63 = vpop.permute.xlu0 %415  ;;  %v2488_v33 = vpop.eup %1869  ;;  %v502_v35 = vadd.f32 %v418_v62, %v374_v40  ;;  %657 = vrot.lane.b32.xlu1 %v2486_v61, %s2056_s22 }
 0x114   : > { %v501_v29 = vadd.f32 %v416_v63, %v373_v41  ;;  %655 = vrot.lane.b32.xlu0 %v2488_v33, %s2056_s22 }
 0x115   : > { %1883 = vrcp.f32 %v502_v35 }
 0x116   : > { %v2498_v28 = vpop.eup %1871  ;;  %1885 = vrcp.f32 %v501_v29  ;;  %v422_v30 = vpop.permute.xlu1 %421 }
 0x117   : > { %v420_v31 = vpop.permute.xlu0 %419  ;;  %v2500_v26 = vpop.eup %1873  ;;  %v504_v27 = vadd.f32 %v422_v30, %v376_v42  ;;  %661 = vrot.lane.b32.xlu1 %v2498_v28, %s2056_s22 }
 0x118   : > { %v503_v32 = vadd.f32 %v420_v31, %v375_v43  ;;  %659 = vrot.lane.b32.xlu0 %v2500_v26, %s2056_s22 }
 0x119   : > { %1887 = vrcp.f32 %v504_v27 }
 0x11a   : > { %v2510_v34 = vpop.eup %1875  ;;  %1889 = vrcp.f32 %v503_v32  ;;  %v426_v36 = vpop.permute.xlu1 %425 }
 0x11b   : > { %v424_v37 = vpop.permute.xlu0 %423  ;;  %v2512_v58 = vpop.eup %1877  ;;  %v506_v1 = vadd.f32 %v426_v36, %v378_v44  ;;  %665 = vrot.lane.b32.xlu1 %v2510_v34, %s2056_s22 }
 0x11c   : > { %v505_v38 = vadd.f32 %v424_v37, %v377_v45  ;;  %663 = vrot.lane.b32.xlu0 %v2512_v58, %s2056_s22 }
 0x11d   : > { %1891 = vrcp.f32 %v506_v1 }
 0x11e   : > { %v2522_v39 = vpop.eup %1879  ;;  %1893 = vrcp.f32 %v505_v38  ;;  %v430_v60 = vpop.permute.xlu1 %429 }
 0x11f   : > { %v428_v40 = vpop.permute.xlu0 %427  ;;  %v2524_v41 = vpop.eup %1881  ;;  %v508_v62 = vadd.f32 %v430_v60, %v380_v46  ;;  %669 = vrot.lane.b32.xlu1 %v2522_v39, %s2056_s22 }
 0x120   : > { %v507_v63 = vadd.f32 %v428_v40, %v379_v47  ;;  %667 = vrot.lane.b32.xlu0 %v2524_v41, %s2056_s22 }
 0x121   : > { %1895 = vrcp.f32 %v508_v62  ;;  %v387_v62 = vadd.f32 %v3451_v55, %v2320_v25  ;;  %v3458_v55 = vld [vmem:[#allocation12_spill] sm:$0xff] }
 0x122   : > { %v2534_v35 = vpop.eup %1883  ;;  %1897 = vrcp.f32 %v507_v63  ;;  %v434_v29 = vpop.permute.xlu1 %433 }
 0x123   : > { %v432_v42 = vpop.permute.xlu0 %431  ;;  %v2536_v43 = vpop.eup %1885  ;;  %v510_v30 = vadd.f32 %v434_v29, %v382_v48  ;;  %673 = vrot.lane.b32.xlu1 %v2534_v35, %s2056_s22 }
 0x124   : > { %v509_v31 = vadd.f32 %v432_v42, %v381_v49  ;;  %671 = vrot.lane.b32.xlu0 %v2536_v43, %s2056_s22 }
 0x125   : > { %1899 = vrcp.f32 %v510_v30 }
 0x126   : > { %v2546_v27 = vpop.eup %1887  ;;  %1901 = vrcp.f32 %v509_v31  ;;  %v438_v32 = vpop.permute.xlu1 %437  ;;  %v3453_v31 = vld [vmem:[#allocation16_spill] sm:$0xff] }
 0x127   : > { %v436_v44 = vpop.permute.xlu0 %435  ;;  %v2548_v45 = vpop.eup %1889  ;;  %v512_v36 = vadd.f32 %v438_v32, %v384_v50  ;;  %677 = vrot.lane.b32.xlu1 %v2546_v27, %s2056_s22  ;;  %v390_v50 = vadd.f32 %v3453_v31, %v3452_v56  ;;  %v3455_v32 = vld [vmem:[#allocation17_spill] sm:$0xff] }
 0x128   : > { %v511_v37 = vadd.f32 %v436_v44, %v383_v51  ;;  %675 = vrot.lane.b32.xlu0 %v2548_v45, %s2056_s22  ;;  %v3454_v51 = vld [vmem:[#allocation10_spill] sm:$0xff] }
 0x129   : > { %1903 = vrcp.f32 %v512_v36  ;;  %v389_v44 = vadd.f32 %v3455_v32, %v3454_v51 }
 0x12a   : > { %v2558_v1 = vpop.eup %1891  ;;  %1905 = vrcp.f32 %v511_v37  ;;  %v442_v38 = vpop.permute.xlu1 %441 }
 0x12b   : > { %v440_v46 = vpop.permute.xlu0 %439  ;;  %v2560_v47 = vpop.eup %1893  ;;  %v514_v60 = vadd.f32 %v442_v38, %v386_v52  ;;  %681 = vrot.lane.b32.xlu1 %v2558_v1, %s2056_s22 }
 0x12c   : > { %v513_v40 = vadd.f32 %v440_v46, %v385_v53  ;;  %679 = vrot.lane.b32.xlu0 %v2560_v47, %s2056_s22 }
 0x12d   : > { %1907 = vrcp.f32 %v514_v60  ;;  %v3456_v60 = vld [vmem:[#allocation11_spill] sm:$0xff] }
 0x12e   : > { %v2570_v63 = vpop.eup %1895  ;;  %1909 = vrcp.f32 %v513_v40  ;;  %v446_v48 = vpop.permute.xlu1 %445  ;;  %v3457_v40 = vld [vmem:[#allocation18_spill] sm:$0xff] }
 0x12f   : > { %v444_v49 = vpop.permute.xlu0 %443  ;;  %v2572_v29 = vpop.eup %1897  ;;  %v516_v42 = vadd.f32 %v446_v48, %v388_v54  ;;  %685 = vrot.lane.b32.xlu1 %v2570_v63, %s2056_s22  ;;  %v392_v54 = vadd.f32 %v3457_v40, %v3456_v60  ;;  %v3462_v40 = vld [vmem:[#allocation14_spill] sm:$0xff] }
 0x130   : > { %v515_v30 = vadd.f32 %v444_v49, %v387_v62  ;;  %683 = vrot.lane.b32.xlu0 %v2572_v29, %s2056_s22  ;;  %v3459_v62 = vld [vmem:[#allocation19_spill] sm:$0xff] }
 0x131   : > { %1911 = vrcp.f32 %v516_v42  ;;  %v391_v48 = vadd.f32 %v3459_v62, %v3458_v55 }
 0x132   : > { %v2582_v36 = vpop.eup %1899  ;;  %1913 = vrcp.f32 %v515_v30  ;;  %v450_v37 = vpop.permute.xlu1 %449 }
 0x133   : > { %v448_v52 = vpop.permute.xlu0 %447  ;;  %v2584_v53 = vpop.eup %1901  ;;  %v518_v38 = vadd.f32 %v450_v37, %v390_v50  ;;  %689 = vrot.lane.b32.xlu1 %v2582_v36, %s2056_s22  ;;  %v3461_v37 = vld [vmem:[#allocation20_spill] sm:$0xff] }
 0x134   : > { %v517_v46 = vadd.f32 %v448_v52, %v389_v44  ;;  %687 = vrot.lane.b32.xlu0 %v2584_v53, %s2056_s22  ;;  %v3460_v44 = vld [vmem:[#allocation13_spill] sm:$0xff] }
 0x135   : > { %1915 = vrcp.f32 %v518_v38  ;;  %v394_v52 = vadd.f32 %v3461_v37, %v3460_v44  ;;  %v3463_v38 = vld [vmem:[#allocation21_spill] sm:$0xff] }
 0x136   : > { %v2594_v49 = vpop.eup %1903  ;;  %1917 = vrcp.f32 %v517_v46  ;;  %v454_v42 = vpop.permute.xlu1 %453  ;;  %v393_v62 = vadd.f32 %v3463_v38, %v3462_v40 }
 0x137   : > { %v452_v30 = vpop.permute.xlu0 %451  ;;  %v2596_v31 = vpop.eup %1905  ;;  %v520_v50 = vadd.f32 %v454_v42, %v392_v54  ;;  %693 = vrot.lane.b32.xlu1 %v2594_v49, %s2056_s22 }
 0x138   : > { %v519_v32 = vadd.f32 %v452_v30, %v391_v48  ;;  %691 = vrot.lane.b32.xlu0 %v2596_v31, %s2056_s22 }
 0x139   : > { %1919 = vrcp.f32 %v520_v50 }
 0x13a   : > { %v2606_v46 = vpop.eup %1907  ;;  %1921 = vrcp.f32 %v519_v32  ;;  %v458_v60 = vpop.permute.xlu1 %457 }
 0x13b   : > { %v456_v55 = vpop.permute.xlu0 %455  ;;  %v2608_v54 = vpop.eup %1909  ;;  %v522_v48 = vadd.f32 %v458_v60, %v394_v52  ;;  %697 = vrot.lane.b32.xlu1 %v2606_v46, %s2056_s22 }
 0x13c   : > { %v521_v42 = vadd.f32 %v456_v55, %v393_v62  ;;  %695 = vrot.lane.b32.xlu0 %v2608_v54, %s2056_s22 }
 0x13d   : > { %1923 = vrcp.f32 %v522_v48 }
 0x13e   : > { %v2614_v30 = vpop.eup %1911  ;;  %1925 = vrcp.f32 %v521_v42 }
 0x13f   : > { %v2616_v50 = vpop.eup %1913  ;;  %701 = vrot.lane.b32.xlu1 %v2614_v30, %s2056_s22 }
 0x140   : > { %699 = vrot.lane.b32.xlu0 %v2616_v50, %s2056_s22 }
 0x142   : > { %v2622_v60 = vpop.eup %1915 }
 0x143   : > { %v2624_v55 = vpop.eup %1917  ;;  %705 = vrot.lane.b32.xlu1 %v2622_v60, %s2056_s22 }
 0x144   : > { %703 = vrot.lane.b32.xlu0 %v2624_v55, %s2056_s22 }
 0x146   : > { %v2630_v32 = vpop.eup %1919 }
 0x147   : > { %3464 = vst [vmem:[#allocation15_spill] sm:$0xff] %v2630_v32  ;;  %v2632_v37 = vpop.eup %1921  ;;  %709 = vrot.lane.b32.xlu1 %v2630_v32, %s2056_s22 }
 0x148   : > { %3465 = vst [vmem:[#allocation9_spill] sm:$0xff] %v2632_v37  ;;  %707 = vrot.lane.b32.xlu0 %v2632_v37, %s2056_s22 }
 0x14a   : > { %v2638_v52 = vpop.eup %1923 }
 0x14b   : > { %3466 = vst [vmem:[#allocation16_spill] sm:$0xff] %v2638_v52  ;;  %v2640_v38 = vpop.eup %1925  ;;  %713 = vrot.lane.b32.xlu1 %v2638_v52, %s2056_s22 }
 0x14c   : > { %711 = vrot.lane.b32.xlu0 %v2640_v38, %s2056_s22 }
 0x14f   : > { %781 = vrot.lane.b32.xlu1 %v2474_v57, %s2058_s23 }
 0x150   : > { %779 = vrot.lane.b32.xlu0 %v2476_v59, %s2058_s23 }
 0x153   : > { %785 = vrot.lane.b32.xlu1 %v2486_v61, %s2058_s23 }
 0x154   : > { %783 = vrot.lane.b32.xlu0 %v2488_v33, %s2058_s23 }
 0x157   : > { %789 = vrot.lane.b32.xlu1 %v2498_v28, %s2058_s23 }
 0x158   : > { %787 = vrot.lane.b32.xlu0 %v2500_v26, %s2058_s23 }
 0x15b   : > { %793 = vrot.lane.b32.xlu1 %v2510_v34, %s2058_s23 }
 0x15c   : > { %791 = vrot.lane.b32.xlu0 %v2512_v58, %s2058_s23 }
 0x15f   : > { %797 = vrot.lane.b32.xlu1 %v2522_v39, %s2058_s23 }
 0x160   : > { %795 = vrot.lane.b32.xlu0 %v2524_v41, %s2058_s23 }
 0x163   : > { %801 = vrot.lane.b32.xlu1 %v2534_v35, %s2058_s23 }
 0x164   : > { %799 = vrot.lane.b32.xlu0 %v2536_v43, %s2058_s23 }
 0x167   : > { %805 = vrot.lane.b32.xlu1 %v2546_v27, %s2058_s23 }
 0x168   : > { %803 = vrot.lane.b32.xlu0 %v2548_v45, %s2058_s23 }
 0x16b   : > { %809 = vrot.lane.b32.xlu1 %v2558_v1, %s2058_s23 }
 0x16c   : > { %807 = vrot.lane.b32.xlu0 %v2560_v47, %s2058_s23 }
 0x16f   : > { %813 = vrot.lane.b32.xlu1 %v2570_v63, %s2058_s23 }
 0x170   : > { %811 = vrot.lane.b32.xlu0 %v2572_v29, %s2058_s23 }
 0x173   : > { %817 = vrot.lane.b32.xlu1 %v2582_v36, %s2058_s23 }
 0x174   : > { %815 = vrot.lane.b32.xlu0 %v2584_v53, %s2058_s23 }
 0x177   : > { %821 = vrot.lane.b32.xlu1 %v2594_v49, %s2058_s23 }
 0x178   : > { %819 = vrot.lane.b32.xlu0 %v2596_v31, %s2058_s23 }
 0x17b   : > { %825 = vrot.lane.b32.xlu1 %v2606_v46, %s2058_s23 }
 0x17c   : > { %823 = vrot.lane.b32.xlu0 %v2608_v54, %s2058_s23 }
 0x17f   : > { %829 = vrot.lane.b32.xlu1 %v2614_v30, %s2058_s23 }
 0x180   : > { %827 = vrot.lane.b32.xlu0 %v2616_v50, %s2058_s23 }
 0x181   : > { %v2698_v62 = vpop.permute.xlu1 %653 }
 0x182   : > { %3467 = vst [vmem:[#allocation10_spill] sm:$0xff] %v2698_v62  ;;  %v2700_v48 = vpop.permute.xlu0 %651 }
 0x183   : > { %3468 = vst [vmem:[#allocation17_spill] sm:$0xff] %v2700_v48  ;;  %833 = vrot.lane.b32.xlu1 %v2622_v60, %s2058_s23 }
 0x184   : > { %831 = vrot.lane.b32.xlu0 %v2624_v55, %s2058_s23 }
 0x185   : > { %v2706_v42 = vpop.permute.xlu1 %657 }
 0x186   : > { %3469 = vst [vmem:[#allocation18_spill] sm:$0xff] %v2706_v42  ;;  %v2708_v44 = vpop.permute.xlu0 %655  ;;  %v588_v42 = vmul.f32 %v2474_v57, %v2210_v3 }
 0x187   : > { %3470 = vst [vmem:[#allocation19_spill] sm:$0xff] %v2708_v44  ;;  %837 = vrot.lane.b32.xlu1 %v2630_v32, %s2058_s23  ;;  %v3475_v32 = vld [vmem:[#allocation8_spill] sm:$0xff] }
 0x188   : > { %835 = vrot.lane.b32.xlu0 %v2632_v37, %s2058_s23  ;;  %v587_v37 = vmul.f32 %v2476_v59, %v3475_v32 }
 0x189   : > { %v2714_v40 = vpop.permute.xlu1 %661 }
 0x18a   : > { %3471 = vst [vmem:[#allocation20_spill] sm:$0xff] %v2714_v40  ;;  %v2716_v62 = vpop.permute.xlu0 %659 }
 0x18b   : > { %3472 = vst [vmem:[#allocation21_spill] sm:$0xff] %v2716_v62  ;;  %841 = vrot.lane.b32.xlu1 %v2638_v52, %s2058_s23  ;;  %v589_v62 = vmul.f32 %v2488_v33, %v2197_v0 }
 0x18c   : > { %839 = vrot.lane.b32.xlu0 %v2640_v38, %s2058_s23 }
 0x18d   : > { %v2722_v48 = vpop.permute.xlu1 %665 }
 0x18e   : > { %3473 = vst [vmem:[#allocation22_spill] sm:$0xff] %v2722_v48  ;;  %v2726_v44 = vpop.permute.xlu0 %663  ;;  %v590_v48 = vmul.f32 %v2486_v61, %v2207_v2 }
 0x18f   : > { %3474 = vst [vmem:[#allocation23_spill] sm:$0xff] %v2726_v44  ;;  %946 = vperm.xlu1 %1858, %v588_v42   ;;  %v591_v44 = vmul.f32 %v2500_v26, %v2220_v5  ;;  %v593_v42 = vmul.f32 %v2512_v58, %v2230_v7 }
 0x190   : > { %941 = vperm.xlu0 %1857, %v587_v37   ;;  %v592_v37 = vmul.f32 %v2498_v28, %v2217_v4 }
 0x191   : > { %v2730_v40 = vpop.permute.xlu1 %669 }
 0x192   : > { %v2734_v52 = vpop.permute.xlu0 %667 }
 0x193   : > { %951 = vperm.xlu1 %1858, %v589_v62   ;;  %v594_v62 = vmul.f32 %v2510_v34, %v2227_v6 }
 0x194   : > { %956 = vperm.xlu0 %1857, %v590_v48   ;;  %v595_v48 = vmul.f32 %v2524_v41, %v2240_v9 }
 0x195   : > { %v2738_v57 = vpop.permute.xlu1 %673 }
 0x196   : > { %v2742_v59 = vpop.permute.xlu0 %671 }
 0x197   : > { %961 = vperm.xlu1 %1858, %v591_v44   ;;  %v596_v44 = vmul.f32 %v2522_v39, %v2237_v8 }
 0x198   : > { %966 = vperm.xlu0 %1857, %v592_v37   ;;  %v597_v37 = vmul.f32 %v2536_v43, %v2250_v11 }
 0x199   : > { %v2746_v33 = vpop.permute.xlu1 %677 }
 0x19a   : > { %v2750_v61 = vpop.permute.xlu0 %675 }
 0x19b   : > { %971 = vperm.xlu1 %1858, %v593_v42   ;;  %v598_v42 = vmul.f32 %v2534_v35, %v2247_v10 }
 0x19c   : > { %976 = vperm.xlu0 %1857, %v594_v62   ;;  %v599_v62 = vmul.f32 %v2548_v45, %v2260_v13 }
 0x19d   : > { %v2754_v26 = vpop.permute.xlu1 %681 }
 0x19e   : > { %v2758_v28 = vpop.permute.xlu0 %679 }
 0x19f   : > { %981 = vperm.xlu1 %1858, %v595_v48   ;;  %v600_v48 = vmul.f32 %v2546_v27, %v2257_v12 }
 0x1a0   : > { %986 = vperm.xlu0 %1857, %v596_v44   ;;  %v601_v44 = vmul.f32 %v2560_v47, %v2270_v15 }
 0x1a1   : > { %v2762_v58 = vpop.permute.xlu1 %685 }
 0x1a2   : > { %v2766_v34 = vpop.permute.xlu0 %683 }
 0x1a3   : > { %991 = vperm.xlu1 %1858, %v597_v37   ;;  %v602_v37 = vmul.f32 %v2558_v1, %v2267_v14 }
 0x1a4   : > { %996 = vperm.xlu0 %1857, %v598_v42   ;;  %v603_v42 = vmul.f32 %v2572_v29, %v2280_v17 }
 0x1a5   : > { %v2770_v41 = vpop.permute.xlu1 %689 }
 0x1a6   : > { %v2774_v39 = vpop.permute.xlu0 %687 }
 0x1a7   : > { %1001 = vperm.xlu1 %1858, %v599_v62   ;;  %v604_v62 = vmul.f32 %v2570_v63, %v2277_v16 }
 0x1a8   : > { %1006 = vperm.xlu0 %1857, %v600_v48   ;;  %v605_v48 = vmul.f32 %v2584_v53, %v2290_v19 }
 0x1a9   : > { %v2778_v43 = vpop.permute.xlu1 %693 }
 0x1aa   : > { %v2782_v35 = vpop.permute.xlu0 %691 }
 0x1ab   : > { %1011 = vperm.xlu1 %1858, %v601_v44   ;;  %v606_v44 = vmul.f32 %v2582_v36, %v2287_v18 }
 0x1ac   : > { %1016 = vperm.xlu0 %1857, %v602_v37   ;;  %v607_v37 = vmul.f32 %v2596_v31, %v2300_v21 }
 0x1ad   : > { %v2786_v45 = vpop.permute.xlu1 %697 }
 0x1ae   : > { %v2790_v27 = vpop.permute.xlu0 %695 }
 0x1af   : > { %1021 = vperm.xlu1 %1858, %v603_v42   ;;  %v608_v42 = vmul.f32 %v2594_v49, %v2297_v20 }
 0x1b0   : > { %1026 = vperm.xlu0 %1857, %v604_v62   ;;  %v609_v62 = vmul.f32 %v2608_v54, %v2310_v23 }
 0x1b1   : > { %v2794_v47 = vpop.permute.xlu1 %701 }
 0x1b2   : > { %v2798_v1 = vpop.permute.xlu0 %699 }
 0x1b3   : > { %1031 = vperm.xlu1 %1858, %v605_v48   ;;  %v610_v48 = vmul.f32 %v2606_v46, %v2307_v22 }
 0x1b4   : > { %1036 = vperm.xlu0 %1857, %v606_v44   ;;  %v611_v44 = vmul.f32 %v2616_v50, %v2320_v25 }
 0x1b5   : > { %v2802_v29 = vpop.permute.xlu1 %705 }
 0x1b6   : > { %3476 = vst [vmem:[#allocation8_spill] sm:$0xff] %v2802_v29  ;;  %v2806_v63 = vpop.permute.xlu0 %703 }
 0x1b7   : > { %1041 = vperm.xlu1 %1858, %v607_v37   ;;  %v612_v37 = vmul.f32 %v2614_v30, %v2317_v24 }
 0x1b8   : > { %1046 = vperm.xlu0 %1857, %v608_v42   ;;  %v613_v42 = vmul.f32 %v2624_v55, %v3454_v51 }
 0x1b9   : > { %v2810_v53 = vpop.permute.xlu1 %709 }
 0x1ba   : > { %3477 = vst [vmem:[#allocation24_spill] sm:$0xff] %v2810_v53  ;;  %v2814_v36 = vpop.permute.xlu0 %707 }
 0x1bb   : > { %1051 = vperm.xlu1 %1858, %v609_v62   ;;  %v614_v62 = vmul.f32 %v2622_v60, %v3452_v56 }
 0x1bc   : > { %1056 = vperm.xlu0 %1857, %v610_v48   ;;  %v3483_v48 = vld [vmem:[#allocation12_spill] sm:$0xff] }
 0x1bd   : > { %v2818_v31 = vpop.permute.xlu1 %713 }
 0x1be   : > { %3478 = vst [vmem:[#allocation25_spill] sm:$0xff] %v2818_v31  ;;  %v2822_v49 = vpop.permute.xlu0 %711  ;;  %v3484_v31 = vld [vmem:[#allocation9_spill] sm:$0xff] }
 0x1bf   : > { %3479 = vst [vmem:[#allocation26_spill] sm:$0xff] %v2822_v49  ;;  %1061 = vperm.xlu1 %1858, %v611_v44   ;;  %v615_v53 = vmul.f32 %v3484_v31, %v3483_v48  ;;  %v3486_v44 = vld [vmem:[#allocation11_spill] sm:$0xff] }
 0x1c0   : > { %1066 = vperm.xlu0 %1857, %v612_v37   ;;  %v3487_v37 = vld [vmem:[#allocation15_spill] sm:$0xff] }
 0x1c1   : > { %v2826_v54 = vpop.permute.xlu1 %781 }
 0x1c2   : > { %3480 = vst [vmem:[#allocation27_spill] sm:$0xff] %v2826_v54  ;;  %v2830_v46 = vpop.permute.xlu0 %779  ;;  %v616_v54 = vmul.f32 %v3487_v37, %v3486_v44 }
 0x1c3   : > { %3481 = vst [vmem:[#allocation28_spill] sm:$0xff] %v2830_v46  ;;  %1071 = vperm.xlu1 %1858, %v613_v42   ;;  %v3489_v46 = vld [vmem:[#allocation14_spill] sm:$0xff]  ;;  %v3491_v42 = vld [vmem:[#allocation13_spill] sm:$0xff] }
 0x1c4   : > { %1076 = vperm.xlu0 %1857, %v614_v62   ;;  %v617_v49 = vmul.f32 %v2640_v38, %v3489_v46  ;;  %v3492_v62 = vld [vmem:[#allocation16_spill] sm:$0xff] }
 0x1c5   : > { %v2834_v50 = vpop.permute.xlu1 %785 }
 0x1c6   : > { %3482 = vst [vmem:[#allocation29_spill] sm:$0xff] %v2834_v50  ;;  %v2838_v30 = vpop.permute.xlu0 %783  ;;  %v618_v50 = vmul.f32 %v3492_v62, %v3491_v42 }
 0x1c7   : > { %3485 = vst [vmem:[#allocation12_spill] sm:$0xff] %v2838_v30  ;;  %1081 = vperm.xlu1 %1858, %v615_v53   ;;  %v3493_v30 = vld [vmem:[#allocation17_spill] sm:$0xff]  ;;  %v3494_v53 = vld [vmem:[#allocation10_spill] sm:$0xff] }
 0x1c8   : > { %1086 = vperm.xlu0 %1857, %v616_v54   ;;  %v747_v29 = vmul.f32 %v3493_v30, %v3475_v32  ;;  %v748_v54 = vmul.f32 %v3494_v53, %v2210_v3  ;;  %v3498_v3 = vld [vmem:[#allocation18_spill] sm:$0xff] }
 0x1c9   : > { %v2842_v55 = vpop.permute.xlu1 %789  ;;  %v750_v53 = vmul.f32 %v3498_v3, %v2207_v2  ;;  %v757_v3 = vmul.f32 %v2742_v59, %v2250_v11  ;;  %v761_v59 = vmul.f32 %v2758_v28, %v2270_v15  ;;  %v765_v15 = vmul.f32 %v2774_v39, %v2290_v19 }
 0x1ca   : > { %3488 = vst [vmem:[#allocation9_spill] sm:$0xff] %v2842_v55  ;;  %v2846_v60 = vpop.permute.xlu0 %787  ;;  %v2059_v55 = vmov 1   ;;  %v769_v19 = vmul.f32 %v2790_v27, %v2310_v23  ;;  %v773_v23 = vmul.f32 %v2806_v63, %v3454_v51  ;;  %v775_v39 = vmul.f32 %v2814_v36, %v3483_v48  ;;  %v3503_v51 = vld [vmem:[#allocation26_spill] sm:$0xff]  ;;  %v1927_v36 = vld [vmem:[%s2194_s16] sm:$0xff] }
 0x1cb   : > { %3490 = vst [vmem:[#allocation11_spill] sm:$0xff] %v2846_v60  ;;  %1091 = vperm.xlu1 %1858, %v617_v49   ;;  %v3495_v49 = vld [vmem:[#allocation19_spill] sm:$0xff]  ;;  %v3497_v60 = vld [vmem:[#allocation21_spill] sm:$0xff] }
 0x1cc   : > { %1096 = vperm.xlu0 %1857, %v618_v50   ;;  %v749_v50 = vmul.f32 %v3495_v49, %v2197_v0  ;;  %v751_v32 = vmul.f32 %v3497_v60, %v2220_v5  ;;  %v3500_v49 = vld [vmem:[#allocation20_spill] sm:$0xff]  ;;  %v755_v60 = vmul.f32 %v2734_v52, %v2240_v9  ;;  %v759_v52 = vmul.f32 %v2750_v61, %v2260_v13 }
 0x1cd   : > { %v2850_v31 = vpop.permute.xlu1 %793  ;;  %v763_v61 = vmul.f32 %v2766_v34, %v2280_v17  ;;  %v767_v17 = vmul.f32 %v2782_v35, %v2300_v21  ;;  %v771_v21 = vmul.f32 %v2798_v1, %v2320_v25  ;;  %v772_v25 = vmul.f32 %v2794_v47, %v2317_v24  ;;  %v3504_v24 = vld [vmem:[#allocation24_spill] sm:$0xff] }
 0x1ce   : > { %v2854_v37 = vpop.permute.xlu0 %791  ;;  %v776_v47 = vmul.f32 %v3504_v24, %v3486_v44 }
 0x1cf   : > { %1859 = vset.pattern.permute.xlu1 %v2059_v55 }
 0x1d0   : > { %1860 = vset.pattern.permute.xlu0 %v2059_v55  ;;  %1165 = vperm.xlu1 %1859, %v747_v29   ;;  %v3499_v29 = vld [vmem:[#allocation23_spill] sm:$0xff] }
 0x1d1   : > { %1170 = vperm.xlu0 %1860, %v748_v54   ;;  %v2858_v38 = vpop.permute.xlu1 %797  ;;  %v753_v54 = vmul.f32 %v3499_v29, %v2230_v7  ;;  %v2060_v29 = vmov 2  }
 0x1d2   : > { %v2862_v62 = vpop.permute.xlu0 %795 }
 0x1d3   : > { %3496 = vst [vmem:[#allocation15_spill] sm:$0xff] %v2862_v62  ;;  %v752_v62 = vmul.f32 %v3500_v49, %v2217_v4 }
 0x1d4   : > { %1175 = vperm.xlu1 %1859, %v749_v50   ;;  %v3501_v50 = vld [vmem:[#allocation22_spill] sm:$0xff] }
 0x1d5   : > { %1185 = vperm.xlu0 %1860, %v751_v32   ;;  %v2866_v30 = vpop.permute.xlu1 %801  ;;  %v754_v32 = vmul.f32 %v3501_v50, %v2227_v6  ;;  %v3507_v50 = vld [vmem:[#allocation29_spill] sm:$0xff] }
 0x1d6   : > { %v2870_v55 = vpop.permute.xlu0 %799 }
 0x1d8   : > { %1180 = vperm.xlu1 %1859, %v750_v53   ;;  %v756_v53 = vmul.f32 %v2730_v40, %v2237_v8  ;;  %v760_v40 = vmul.f32 %v2746_v33, %v2257_v12  ;;  %v764_v12 = vmul.f32 %v2762_v58, %v2277_v16  ;;  %v768_v16 = vmul.f32 %v2778_v43, %v2297_v20 }
 0x1d9   : > { %1195 = vperm.xlu0 %1860, %v753_v54   ;;  %v2874_v0 = vpop.permute.xlu1 %805 }
 0x1da   : > { %v2878_v5 = vpop.permute.xlu0 %803 }
 0x1dc   : > { %1190 = vperm.xlu1 %1859, %v752_v62   ;;  %v758_v62 = vmul.f32 %v2738_v57, %v2247_v10  ;;  %v762_v10 = vmul.f32 %v2754_v26, %v2267_v14  ;;  %v766_v14 = vmul.f32 %v2770_v41, %v2287_v18  ;;  %v770_v18 = vmul.f32 %v2786_v45, %v2307_v22  ;;  %v3502_v22 = vld [vmem:[#allocation8_spill] sm:$0xff] }
 0x1dd   : > { %1205 = vperm.xlu0 %1860, %v755_v60   ;;  %v2882_v2 = vpop.permute.xlu1 %809  ;;  %v774_v43 = vmul.f32 %v3502_v22, %v3452_v56  ;;  %v777_v45 = vmul.f32 %v3503_v51, %v3489_v46  ;;  %v3505_v56 = vld [vmem:[#allocation28_spill] sm:$0xff]  ;;  %v3506_v46 = vld [vmem:[#allocation25_spill] sm:$0xff]  ;;  %v1928_v60 = vld [vmem:[%s2194_s16 + $0x18] sm:$0xff] }
 0x1de   : > { %v2886_v7 = vpop.permute.xlu0 %807  ;;  %v875_v48 = vmul.f32 %v1927_v36, %v3505_v56  ;;  %v778_v54 = vmul.f32 %v3506_v46, %v3491_v42  ;;  %v1930_v42 = vld [vmem:[%s2194_s16 + $0x28] sm:$0xff] }
 0x1df   : > { %v1934_v22 = vld [vmem:[%s2194_s16 + $0x48] sm:$0xff] }
 0x1e0   : > { %1200 = vperm.xlu1 %1859, %v754_v32   ;;  %v878_v32 = vmul.f32 %v1928_v60, %v3507_v50  ;;  %v1939_v50 = vld [vmem:[%s2194_s16 + $0x50] sm:$0xff] }
 0x1e1   : > { %1215 = vperm.xlu0 %1860, %v757_v3   ;;  %v2890_v4 = vpop.permute.xlu1 %813 }
 0x1e2   : > { %v2894_v9 = vpop.permute.xlu0 %811 }
 0x1e4   : > { %1210 = vperm.xlu1 %1859, %v756_v53   ;;  %v1929_v53 = vld [vmem:[%s2194_s16 + $0x8] sm:$0xff] }
 0x1e5   : > { %1225 = vperm.xlu0 %1860, %v759_v52   ;;  %v2898_v6 = vpop.permute.xlu1 %817  ;;  %v3508_v52 = vld [vmem:[#allocation27_spill] sm:$0xff] }
 0x1e6   : > { %v2902_v11 = vpop.permute.xlu0 %815 }
 0x1e8   : > { %1220 = vperm.xlu1 %1859, %v758_v62   ;;  %v876_v62 = vmul.f32 %v1929_v53, %v3508_v52  ;;  %v1940_v53 = vld [vmem:[%s2194_s16 + $0x78] sm:$0xff] }
 0x1e9   : > { %1235 = vperm.xlu0 %1860, %v761_v59   ;;  %v2906_v8 = vpop.permute.xlu1 %821  ;;  %v890_v52 = vmul.f32 %v1940_v53, %v2882_v2 }
 0x1ea   : > { %v2910_v13 = vpop.permute.xlu0 %819 }
 0x1ec   : > { %1230 = vperm.xlu1 %1859, %v760_v40   ;;  %v3509_v40 = vld [vmem:[#allocation9_spill] sm:$0xff] }
 0x1ed   : > { %1245 = vperm.xlu0 %1860, %v763_v61   ;;  %v2916_v57 = vpop.permute.xlu1 %825  ;;  %v880_v61 = vmul.f32 %v1930_v42, %v3509_v40  ;;  %v1941_v42 = vld [vmem:[%s2194_s16 + $0x60] sm:$0xff] }
 0x1ee   : > { %v2920_v28 = vpop.permute.xlu0 %823 }
 0x1f0   : > { %1240 = vperm.xlu1 %1859, %v762_v10  }
 0x1f1   : > { %1255 = vperm.xlu0 %1860, %v765_v15   ;;  %v2926_v33 = vpop.permute.xlu1 %829  ;;  %v1931_v15 = vld [vmem:[%s2194_s16 + $0x10] sm:$0xff] }
 0x1f2   : > { %v2928_v34 = vpop.permute.xlu0 %827 }
 0x1f4   : > { %1250 = vperm.xlu1 %1859, %v764_v12   ;;  %v3510_v12 = vld [vmem:[#allocation12_spill] sm:$0xff] }
 0x1f5   : > { %1265 = vperm.xlu0 %1860, %v767_v17   ;;  %v2936_v26 = vpop.permute.xlu1 %833  ;;  %v877_v17 = vmul.f32 %v1931_v15, %v3510_v12  ;;  %v1943_v12 = vld [vmem:[%s2194_s16 + $0x70] sm:$0xff] }
 0x1f6   : > { %v2940_v58 = vpop.permute.xlu0 %831  ;;  %v889_v2 = vmul.f32 %v1943_v12, %v2886_v7  ;;  %v1956_v12 = vld [vmem:[%s2194_s16 + $0xf8] sm:$0xff] }
 0x1f8   : > { %1260 = vperm.xlu1 %1859, %v766_v14  }
 0x1f9   : > { %1275 = vperm.xlu0 %1860, %v769_v19   ;;  %v2946_v41 = vpop.permute.xlu1 %837  ;;  %v1932_v19 = vld [vmem:[%s2194_s16 + $0x38] sm:$0xff] }
 0x1fa   : > { %v2948_v20 = vpop.permute.xlu0 %835 }
 0x1fc   : > { %1270 = vperm.xlu1 %1859, %v768_v16   ;;  %v882_v16 = vmul.f32 %v1932_v19, %v2850_v31  ;;  %v1944_v19 = vld [vmem:[%s2194_s16 + $0x98] sm:$0xff] }
 0x1fd   : > { %1285 = vperm.xlu0 %1860, %v771_v21   ;;  %v2956_v35 = vpop.permute.xlu1 %841 }
 0x1fe   : > { %v2960_v27 = vpop.permute.xlu0 %839 }
 0x200   : > { %1280 = vperm.xlu1 %1859, %v770_v18   ;;  %v1933_v18 = vld [vmem:[%s2194_s16 + $0x20] sm:$0xff] }
 0x201   : > { %1295 = vperm.xlu0 %1860, %v773_v23   ;;  %v3511_v23 = vld [vmem:[#allocation11_spill] sm:$0xff] }
 0x204   : > { %1290 = vperm.xlu1 %1859, %v772_v25   ;;  %v879_v25 = vmul.f32 %v1933_v18, %v3511_v23  ;;  %v1945_v18 = vld [vmem:[%s2194_s16 + $0x80] sm:$0xff] }
 0x205   : > { %1305 = vperm.xlu0 %1860, %v775_v39  }
 0x208   : > { %1300 = vperm.xlu1 %1859, %v774_v43   ;;  %v884_v43 = vmul.f32 %v1934_v22, %v2858_v38  ;;  %v3512_v38 = vld [vmem:[#allocation15_spill] sm:$0xff] }
 0x209   : > { %1315 = vperm.xlu0 %1860, %v777_v45   ;;  %v1935_v45 = vld [vmem:[%s2194_s16 + $0x30] sm:$0xff] }
 0x20a   : > { %v2964_v1 = vpop.permute.xlu1 %946  ;;  %v881_v31 = vmul.f32 %v1935_v45, %v2854_v37 }
 0x20b   : > { %v2966_v63 = vpop.permute.xlu0 %941 }
 0x20c   : > { %1310 = vperm.xlu1 %1859, %v776_v47   ;;  %v1936_v47 = vld [vmem:[%s2194_s16 + $0x58] sm:$0xff] }
 0x20d   : > { %1861 = vset.pattern.permute.xlu0 %v2060_v29  ;;  %v886_v36 = vmul.f32 %v1936_v47, %v2866_v30  ;;  %v885_v30 = vmul.f32 %v1939_v50, %v2870_v55  ;;  %v1952_v50 = vld [vmem:[%s2194_s16 + $0xd8] sm:$0xff] }
 0x20e   : > { %1421 = vperm.xlu0 %1861, %v875_v48   ;;  %v2972_v49 = vpop.permute.xlu1 %951  ;;  %v1937_v48 = vld [vmem:[%s2194_s16 + $0x40] sm:$0xff] }
 0x20f   : > { %v2974_v44 = vpop.permute.xlu0 %956 }
 0x210   : > { %1320 = vperm.xlu1 %1859, %v778_v54   ;;  %v1938_v54 = vld [vmem:[%s2194_s16 + $0x68] sm:$0xff] }
 0x211   : > { %v888_v37 = vmul.f32 %v1938_v54, %v2874_v0  ;;  %v887_v0 = vmul.f32 %v1941_v42, %v2878_v5  ;;  %v894_v5 = vmul.f32 %v1944_v19, %v2898_v6  ;;  %v1951_v54 = vld [vmem:[%s2194_s16 + $0xb0] sm:$0xff]  ;;  %v1954_v42 = vld [vmem:[%s2194_s16 + $0xe8] sm:$0xff]  ;;  %v1957_v19 = vld [vmem:[%s2194_s16 + $0xe0] sm:$0xff] }
 0x212   : > { %1436 = vperm.xlu0 %1861, %v878_v32   ;;  %v2978_v3 = vpop.permute.xlu1 %961 }
 0x213   : > { %v2982_v59 = vpop.permute.xlu0 %966 }
 0x214   : > { %1862 = vset.pattern.permute.xlu1 %v2060_v29  ;;  %v883_v29 = vmul.f32 %v1937_v48, %v3512_v38  ;;  %v1950_v38 = vld [vmem:[%s2194_s16 + $0xc8] sm:$0xff] }
 0x215   : > { %1426 = vperm.xlu1 %1862, %v876_v62  }
 0x216   : > { %1446 = vperm.xlu0 %1861, %v880_v61   ;;  %v2986_v10 = vpop.permute.xlu1 %971  ;;  %v1942_v61 = vld [vmem:[%s2194_s16 + $0x88] sm:$0xff] }
 0x217   : > { %v2990_v14 = vpop.permute.xlu0 %976  ;;  %v892_v55 = vmul.f32 %v1942_v61, %v2890_v4  ;;  %v891_v4 = vmul.f32 %v1945_v18, %v2894_v9 }
 0x219   : > { %1431 = vperm.xlu1 %1862, %v877_v17  }
 0x21a   : > { %1456 = vperm.xlu0 %1861, %v882_v16   ;;  %v2994_v21 = vpop.permute.xlu1 %981 }
 0x21b   : > { %v2998_v39 = vpop.permute.xlu0 %986 }
 0x21d   : > { %1441 = vperm.xlu1 %1862, %v879_v25   ;;  %v1946_v25 = vld [vmem:[%s2194_s16 + $0xa8] sm:$0xff] }
 0x21e   : > { %1466 = vperm.xlu0 %1861, %v884_v43   ;;  %v3002_v51 = vpop.permute.xlu1 %991  ;;  %v896_v7 = vmul.f32 %v1946_v25, %v2906_v8  ;;  %v1947_v43 = vld [vmem:[%s2194_s16 + $0x90] sm:$0xff] }
 0x21f   : > { %v3006_v24 = vpop.permute.xlu0 %996  ;;  %v893_v6 = vmul.f32 %v1947_v43, %v2902_v11  ;;  %v900_v11 = vmul.f32 %v1950_v38, %v2926_v33  ;;  %v1953_v33 = vld [vmem:[%s2194_s16 + $0xc0] sm:$0xff]  ;;  %v909_v25 = vld [vmem:[%s2180_s8 + $0x30] sm:$0xff]  ;;  %v1133_v43 = vld [vmem:[%s2180_s8 + $0x38] sm:$0xff] }
 0x220   : > { %v899_v53 = vmul.f32 %v1953_v33, %v2928_v34  ;;  %v906_v34 = vmul.f32 %v1956_v12, %v2956_v35  ;;  %v911_v35 = vld [vmem:[%s2180_s8 + $0x60] sm:$0xff] }
 0x221   : > { %1451 = vperm.xlu1 %1862, %v881_v31   ;;  %v1948_v31 = vld [vmem:[%s2194_s16 + $0xb8] sm:$0xff] }
 0x222   : > { %1476 = vperm.xlu0 %1861, %v886_v36   ;;  %v3010_v56 = vpop.permute.xlu1 %1001  ;;  %v898_v9 = vmul.f32 %v1948_v31, %v2916_v57  ;;  %v1949_v36 = vld [vmem:[%s2194_s16 + $0xa0] sm:$0xff]  ;;  %v897_v57 = vmul.f32 %v1951_v54, %v2920_v28  ;;  %v904_v28 = vmul.f32 %v1954_v42, %v2946_v41  ;;  %v1958_v31 = vld [vmem:[%s2194_s16 + $0xf0] sm:$0xff] }
 0x223   : > { %v3014_v46 = vpop.permute.xlu0 %1006  ;;  %v895_v8 = vmul.f32 %v1949_v36, %v2910_v13  ;;  %v902_v13 = vmul.f32 %v1952_v50, %v2936_v26  ;;  %v1955_v26 = vld [vmem:[%s2194_s16 + $0xd0] sm:$0xff]  ;;  %v1132_v41 = vld [vmem:[%s2180_s8 + $0x20] sm:$0xff] }
 0x224   : > { %v901_v61 = vmul.f32 %v1955_v26, %v2940_v58 }
 0x225   : > { %1461 = vperm.xlu1 %1862, %v883_v29  }
 0x226   : > { %1486 = vperm.xlu0 %1861, %v888_v37   ;;  %v3018_v60 = vpop.permute.xlu1 %1011 }
 0x227   : > { %v3022_v32 = vpop.permute.xlu0 %1016 }
 0x229   : > { %1471 = vperm.xlu1 %1862, %v885_v30  }
 0x22a   : > { %1496 = vperm.xlu0 %1861, %v890_v52   ;;  %v3026_v62 = vpop.permute.xlu1 %1021 }
 0x22b   : > { %v3030_v40 = vpop.permute.xlu0 %1026 }
 0x22d   : > { %1481 = vperm.xlu1 %1862, %v887_v0  }
 0x22e   : > { %1506 = vperm.xlu0 %1861, %v892_v55   ;;  %v3034_v15 = vpop.permute.xlu1 %1031 }
 0x22f   : > { %v3038_v17 = vpop.permute.xlu0 %1036 }
 0x231   : > { %1491 = vperm.xlu1 %1862, %v889_v2   ;;  %v908_v2 = vld [vmem:[%s2180_s8 + $0x18] sm:$0xff] }
 0x232   : > { %1516 = vperm.xlu0 %1861, %v894_v5   ;;  %v3042_v16 = vpop.permute.xlu1 %1041  ;;  %v903_v5 = vmul.f32 %v1957_v19, %v2948_v20  ;;  %v1100_v58 = vmul.f32 %v2964_v1, %v908_v2  ;;  %v1141_v19 = vld [vmem:[%s2180_s8 + $0xf8] sm:$0xff] }
 0x233   : > { %v3046_v23 = vpop.permute.xlu0 %1046 }
 0x235   : > { %1501 = vperm.xlu1 %1862, %v891_v4  }
 0x236   : > { %1526 = vperm.xlu0 %1861, %v896_v7   ;;  %v3050_v22 = vpop.permute.xlu1 %1051 }
 0x237   : > { %v3054_v45 = vpop.permute.xlu0 %1056 }
 0x239   : > { %1511 = vperm.xlu1 %1862, %v893_v6   ;;  %v1135_v6 = vld [vmem:[%s2180_s8 + $0x68] sm:$0xff] }
 0x23a   : > { %1536 = vperm.xlu0 %1861, %v898_v9   ;;  %v3058_v47 = vpop.permute.xlu1 %1061  ;;  %v905_v9 = vmul.f32 %v1958_v31, %v2960_v27 }
 0x23b   : > { %v3062_v48 = vpop.permute.xlu0 %1066 }
 0x23d   : > { %1521 = vperm.xlu1 %1862, %v895_v8   ;;  %v1101_v8 = vmul.f32 %v2972_v49, %v909_v25 }
 0x23e   : > { %1546 = vperm.xlu0 %1861, %v900_v11   ;;  %v3066_v29 = vpop.permute.xlu1 %1071  ;;  %v1103_v11 = vmul.f32 %v2978_v3, %v911_v35  ;;  %v1139_v3 = vld [vmem:[%s2180_s8 + $0xc8] sm:$0xff] }
 0x23f   : > { %v3070_v37 = vpop.permute.xlu0 %1076 }
 0x241   : > { %1531 = vperm.xlu1 %1862, %v897_v57   ;;  %v913_v57 = vld [vmem:[%s2180_s8 + $0x90] sm:$0xff] }
 0x242   : > { %1556 = vperm.xlu0 %1861, %v902_v13   ;;  %v3074_v30 = vpop.permute.xlu1 %1081  ;;  %v1137_v13 = vld [vmem:[%s2180_s8 + $0x98] sm:$0xff]  ;;  %v1105_v42 = vmul.f32 %v2986_v10, %v913_v57  ;;  %v923_v57 = vld [vmem:[%s2180_s8 + $0x180] sm:$0xff] }
 0x243   : > { %v3078_v52 = vpop.permute.xlu0 %1086 }
 0x245   : > { %1541 = vperm.xlu1 %1862, %v899_v53  }
 0x246   : > { %1566 = vperm.xlu0 %1861, %v904_v28   ;;  %v3082_v0 = vpop.permute.xlu1 %1091  ;;  %v915_v28 = vld [vmem:[%s2180_s8 + $0xc0] sm:$0xff] }
 0x247   : > { %v3086_v55 = vpop.permute.xlu0 %1096 }
 0x249   : > { %1551 = vperm.xlu1 %1862, %v901_v61  }
 0x24a   : > { %1576 = vperm.xlu0 %1861, %v906_v34   ;;  %v1107_v34 = vmul.f32 %v2994_v21, %v915_v28 }
 0x24b   : > { %v3094_v18 = vpop.permute.xlu1 %1165 }
 0x24c   : > { %v1171_v4 = vpop.permute.xlu0 %1170 }
 0x24d   : > { %v1324_v7 = vmul.f32 %v1171_v4, %v1132_v41  ;;  %1561 = vperm.xlu1 %1862, %v903_v5   ;;  %v917_v41 = vld [vmem:[%s2180_s8 + $0xf0] sm:$0xff] }
 0x24f   : > { %v3103_v36 = vadd.f32 %v1324_v7, %v1100_v58  ;;  %v1176_v20 = vpop.permute.xlu1 %1175  ;;  %v1109_v58 = vmul.f32 %v3002_v51, %v917_v41  ;;  %v919_v7 = vld [vmem:[%s2180_s8 + $0x120] sm:$0xff] }
 0x250   : > { %v1325_v38 = vmul.f32 %v1176_v20, %v1133_v43  ;;  %v1186_v1 = vpop.permute.xlu0 %1185  ;;  %v1143_v43 = vld [vmem:[%s2180_s8 + $0x128] sm:$0xff]  ;;  %v1111_v31 = vmul.f32 %v3010_v56, %v919_v7  ;;  %v921_v20 = vld [vmem:[%s2180_s8 + $0x150] sm:$0xff] }
 0x251   : > { %v1327_v54 = vmul.f32 %v1186_v1, %v1135_v6  ;;  %1571 = vperm.xlu1 %1862, %v905_v9  }
 0x252   : > { %v3108_v50 = vadd.f32 %v1325_v38, %v1101_v8  ;;  %v1145_v8 = vld [vmem:[%s2180_s8 + $0x158] sm:$0xff] }
 0x253   : > { %v3111_v27 = vadd.f32 %v1327_v54, %v1103_v11  ;;  %v3113_v33 = vpop.permute.xlu1 %1180  ;;  %v1113_v11 = vmul.f32 %v3018_v60, %v921_v20 }
 0x254   : > { %v1196_v53 = vpop.permute.xlu0 %1195 }
 0x255   : > { %v1329_v49 = vmul.f32 %v1196_v53, %v1137_v13  ;;  %v1147_v13 = vld [vmem:[%s2180_s8 + $0x188] sm:$0xff] }
 0x257   : > { %v3118_v26 = vadd.f32 %v1329_v49, %v1105_v42  ;;  %v3120_v61 = vpop.permute.xlu1 %1190  ;;  %v1115_v49 = vmul.f32 %v3026_v62, %v923_v57  ;;  %v1155_v57 = vld [vmem:[%s2180_s8 + $0x248] sm:$0xff] }
 0x258   : > { %v1206_v12 = vpop.permute.xlu0 %1205 }
 0x259   : > { %v1331_v2 = vmul.f32 %v1206_v12, %v1139_v3  ;;  %v925_v3 = vld [vmem:[%s2180_s8 + $0x1b0] sm:$0xff]  ;;  %v1149_v12 = vld [vmem:[%s2180_s8 + $0x1b8] sm:$0xff] }
 0x25a   : > { %v1117_v41 = vmul.f32 %v3034_v15, %v925_v3  ;;  %v933_v3 = vld [vmem:[%s2180_s8 + $0x270] sm:$0xff] }
 0x25b   : > { %v3125_v5 = vadd.f32 %v1331_v2, %v1107_v34  ;;  %v3127_v10 = vpop.permute.xlu1 %1200 }
 0x25c   : > { %v1216_v4 = vpop.permute.xlu0 %1215 }
 0x25d   : > { %v1333_v25 = vmul.f32 %v1216_v4, %v1141_v19  ;;  %v927_v4 = vld [vmem:[%s2180_s8 + $0x1e0] sm:$0xff] }
 0x25f   : > { %v3132_v35 = vadd.f32 %v1333_v25, %v1109_v58  ;;  %v3134_v21 = vpop.permute.xlu1 %1210  ;;  %v1151_v58 = vld [vmem:[%s2180_s8 + $0x1e8] sm:$0xff] }
 0x260   : > { %v1226_v6 = vpop.permute.xlu0 %1225 }
 0x261   : > { %v1335_v9 = vmul.f32 %v1226_v6, %v1143_v43  ;;  %v1119_v43 = vmul.f32 %v3042_v16, %v927_v4 }
 0x263   : > { %v3139_v38 = vadd.f32 %v1335_v9, %v1111_v31  ;;  %v3141_v51 = vpop.permute.xlu1 %1220  ;;  %v929_v31 = vld [vmem:[%s2180_s8 + $0x210] sm:$0xff]  ;;  %v1153_v9 = vld [vmem:[%s2180_s8 + $0x218] sm:$0xff] }
 0x264   : > { %v1236_v1 = vpop.permute.xlu0 %1235 }
 0x265   : > { %v1337_v54 = vmul.f32 %v1236_v1, %v1145_v8  ;;  %v1121_v1 = vmul.f32 %v3050_v22, %v929_v31 }
 0x267   : > { %v3146_v53 = vadd.f32 %v1337_v54, %v1113_v11  ;;  %v3148_v56 = vpop.permute.xlu1 %1230  ;;  %v931_v54 = vld [vmem:[%s2180_s8 + $0x240] sm:$0xff] }
 0x268   : > { %v1246_v42 = vpop.permute.xlu0 %1245 }
 0x269   : > { %v1339_v28 = vmul.f32 %v1246_v42, %v1147_v13 }
 0x26b   : > { %v3153_v34 = vadd.f32 %v1339_v28, %v1115_v49  ;;  %v3155_v60 = vpop.permute.xlu1 %1240  ;;  %v1123_v49 = vmul.f32 %v3058_v47, %v931_v54 }
 0x26c   : > { %v1256_v2 = vpop.permute.xlu0 %1255 }
 0x26d   : > { %v1341_v19 = vmul.f32 %v1256_v2, %v1149_v12  ;;  %v1157_v12 = vld [vmem:[%s2180_s8 + $0x278] sm:$0xff] }
 0x26f   : > { %v3160_v25 = vadd.f32 %v1341_v19, %v1117_v41  ;;  %v3162_v62 = vpop.permute.xlu1 %1250  ;;  %v1125_v19 = vmul.f32 %v3066_v29, %v933_v3 }
 0x270   : > { %v1266_v7 = vpop.permute.xlu0 %1265 }
 0x271   : > { %v1343_v6 = vmul.f32 %v1266_v7, %v1151_v58  ;;  %v935_v58 = vld [vmem:[%s2180_s8 + $0x2a0] sm:$0xff]  ;;  %v1159_v7 = vld [vmem:[%s2180_s8 + $0x2a8] sm:$0xff] }
 0x272   : > { %v1127_v31 = vmul.f32 %v3074_v30, %v935_v58  ;;  %v1134_v30 = vld [vmem:[%s2180_s8 + $0x50] sm:$0xff]  ;;  %v910_v58 = vld [vmem:[%s2180_s8 + $0x48] sm:$0xff] }
 0x273   : > { %v3167_v20 = vadd.f32 %v1343_v6, %v1119_v43  ;;  %v3169_v15 = vpop.permute.xlu1 %1260 }
 0x274   : > { %v1276_v8 = vpop.permute.xlu0 %1275 }
 0x275   : > { %v1345_v11 = vmul.f32 %v1276_v8, %v1153_v9  ;;  %v937_v8 = vld [vmem:[%s2180_s8 + $0x2d0] sm:$0xff] }
 0x277   : > { %v3174_v13 = vadd.f32 %v1345_v11, %v1121_v1  ;;  %v3176_v16 = vpop.permute.xlu1 %1270  ;;  %v1161_v1 = vld [vmem:[%s2180_s8 + $0x2d8] sm:$0xff]  ;;  %v1131_v11 = vld [vmem:[%s2180_s8 + $0x8] sm:$0xff] }
 0x278   : > { %v1286_v42 = vpop.permute.xlu0 %1285  ;;  %v1323_v3 = vmul.f32 %v3094_v18, %v1131_v11  ;;  %v1136_v18 = vld [vmem:[%s2180_s8 + $0x80] sm:$0xff] }
 0x279   : > { %v1347_v28 = vmul.f32 %v1286_v42, %v1155_v57  ;;  %v907_v42 = vld [vmem:[%s2180_s8] sm:$0xff] }
 0x27b   : > { %v3181_v2 = vadd.f32 %v1347_v28, %v1123_v49  ;;  %v3183_v22 = vpop.permute.xlu1 %1280  ;;  %v1129_v49 = vmul.f32 %v3082_v0, %v937_v8  ;;  %v1326_v0 = vmul.f32 %v3113_v33, %v1134_v30  ;;  %v1390_v8 = vld [vmem:[%s2180_s8 + $0x58] sm:$0xff]  ;;  %v1392_v30 = vld [vmem:[%s2180_s8 + $0x88] sm:$0xff] }
 0x27c   : > { %v1296_v41 = vpop.permute.xlu0 %1295 }
 0x27d   : > { %v1349_v4 = vmul.f32 %v1296_v41, %v1157_v12 }
 0x27f   : > { %v3188_v43 = vadd.f32 %v1349_v4, %v1125_v19  ;;  %v3190_v47 = vpop.permute.xlu1 %1290  ;;  %v1387_v19 = vld [vmem:[%s2180_s8 + $0x10] sm:$0xff]  ;;  %v1099_v4 = vmul.f32 %v2966_v63, %v907_v42 }
 0x280   : > { %v1306_v6 = vpop.permute.xlu0 %1305 }
 0x281   : > { %v1351_v9 = vmul.f32 %v1306_v6, %v1159_v7  ;;  %v1355_v6 = vadd.f32 %v1323_v3, %v1099_v4  ;;  %v1138_v3 = vld [vmem:[%s2180_s8 + $0xb0] sm:$0xff] }
 0x283   : > { %v3196_v54 = vadd.f32 %v1351_v9, %v1127_v31  ;;  %v3198_v29 = vpop.permute.xlu1 %1300 }
 0x284   : > { %v1316_v57 = vpop.permute.xlu0 %1315 }
 0x285   : > { %v1353_v28 = vmul.f32 %v1316_v57, %v1161_v1  ;;  %v1102_v1 = vmul.f32 %v2974_v44, %v910_v58  ;;  %v912_v57 = vld [vmem:[%s2180_s8 + $0x78] sm:$0xff]  ;;  %v914_v58 = vld [vmem:[%s2180_s8 + $0xa8] sm:$0xff] }
 0x286   : > { %v1104_v44 = vmul.f32 %v2982_v59, %v912_v57  ;;  %v1394_v59 = vld [vmem:[%s2180_s8 + $0xb8] sm:$0xff] }
 0x287   : > { %v3204_v12 = vadd.f32 %v1353_v28, %v1129_v49  ;;  %v3206_v41 = vpop.permute.xlu1 %1310  ;;  %v1358_v42 = vadd.f32 %v1326_v0, %v1102_v1  ;;  %v1328_v49 = vmul.f32 %v3120_v61, %v1136_v18  ;;  %v1388_v28 = vld [vmem:[%s2180_s8 + $0x28] sm:$0xff]  ;;  %v1330_v0 = vmul.f32 %v3127_v10, %v1138_v3  ;;  %v1389_v18 = vld [vmem:[%s2180_s8 + $0x40] sm:$0xff] }
 0x289   : > { %v1422_v7 = vpop.permute.xlu0 %1421 }
 0x28a   : > { %v1579_v31 = vmul.f32 %v1422_v7, %v1387_v19 }
 0x28b   : > { %v3214_v9 = vpop.permute.xlu1 %1320 }
 0x28c   : > { %v1611_v11 = vadd.f32 %v1579_v31, %v1355_v6  ;;  %v1360_v6 = vadd.f32 %v1328_v49, %v1104_v44  ;;  %v1396_v44 = vld [vmem:[%s2180_s8 + $0xe8] sm:$0xff] }
 0x28d   : > { %v1437_v63 = vpop.permute.xlu0 %1436 }
 0x28e   : > { %1643 = vst [vmem:[%s3220_s25] sm:$0xff] %v1611_v11  ;;  %v1582_v33 = vmul.f32 %v1437_v63, %v1390_v8  ;;  %v1140_v8 = vld [vmem:[%s2180_s8 + $0xe0] sm:$0xff]  ;;  %v1106_v11 = vmul.f32 %v2990_v14, %v914_v58 }
 0x290   : > { %v1614_v19 = vadd.f32 %v1582_v33, %v1358_v42  ;;  %v1427_v4 = vpop.permute.xlu1 %1426  ;;  %v916_v42 = vld [vmem:[%s2180_s8 + $0xd8] sm:$0xff]  ;;  %v1362_v33 = vadd.f32 %v1330_v0, %v1106_v11 }
 0x291   : > { %v1580_v61 = vmul.f32 %v1427_v4, %v1388_v28  ;;  %v1447_v7 = vpop.permute.xlu0 %1446  ;;  %v1332_v28 = vmul.f32 %v3134_v21, %v1140_v8  ;;  %v1398_v8 = vld [vmem:[%s2180_s8 + $0x118] sm:$0xff] }
 0x292   : > { %1646 = vst [vmem:[%s3220_s25 + $0x18] sm:$0xff] %v1614_v19  ;;  %v1584_v31 = vmul.f32 %v1447_v7, %v1392_v30  ;;  %v1142_v30 = vld [vmem:[%s2180_s8 + $0x110] sm:$0xff]  ;;  %v1108_v19 = vmul.f32 %v2998_v39, %v916_v42 }
 0x293   : > { %v1612_v1 = vadd.f32 %v1580_v61, %v3103_v36  ;;  %v1391_v36 = vld [vmem:[%s2180_s8 + $0x70] sm:$0xff]  ;;  %v918_v61 = vld [vmem:[%s2180_s8 + $0x108] sm:$0xff]  ;;  %v1334_v0 = vmul.f32 %v3141_v51, %v1142_v30 }
 0x294   : > { %v1616_v57 = vadd.f32 %v1584_v31, %v1360_v6  ;;  %v1432_v63 = vpop.permute.xlu1 %1431  ;;  %v1364_v6 = vadd.f32 %v1332_v28, %v1108_v19  ;;  %v1400_v28 = vld [vmem:[%s2180_s8 + $0x148] sm:$0xff] }
 0x295   : > { %1644 = vst [vmem:[%s3220_s25 + $0x8] sm:$0xff] %v1612_v1  ;;  %v1581_v10 = vmul.f32 %v1432_v63, %v1389_v18  ;;  %v1457_v49 = vpop.permute.xlu0 %1456  ;;  %v1144_v18 = vld [vmem:[%s2180_s8 + $0x140] sm:$0xff]  ;;  %v1110_v1 = vmul.f32 %v3006_v24, %v918_v61 }
 0x296   : > { %1648 = vst [vmem:[%s3220_s25 + $0x28] sm:$0xff] %v1616_v57  ;;  %v1586_v3 = vmul.f32 %v1457_v49, %v1394_v59  ;;  %v920_v57 = vld [vmem:[%s2180_s8 + $0x138] sm:$0xff]  ;;  %v1148_v61 = vld [vmem:[%s2180_s8 + $0x1a0] sm:$0xff] }
 0x297   : > { %v1613_v14 = vadd.f32 %v1581_v10, %v3108_v50  ;;  %v1393_v50 = vld [vmem:[%s2180_s8 + $0xa0] sm:$0xff]  ;;  %v1366_v42 = vadd.f32 %v1334_v0, %v1110_v1  ;;  %v1336_v10 = vmul.f32 %v3148_v56, %v1144_v18  ;;  %v1150_v1 = vld [vmem:[%s2180_s8 + $0x1d0] sm:$0xff] }
 0x298   : > { %v1618_v4 = vadd.f32 %v1586_v3, %v1362_v33  ;;  %v1442_v58 = vpop.permute.xlu1 %1441  ;;  %v1146_v33 = vld [vmem:[%s2180_s8 + $0x170] sm:$0xff]  ;;  %v1112_v3 = vmul.f32 %v3014_v46, %v920_v57 }
 0x299   : > { %1645 = vst [vmem:[%s3220_s25 + $0x10] sm:$0xff] %v1613_v14  ;;  %v1583_v21 = vmul.f32 %v1442_v58, %v1391_v36  ;;  %v1467_v7 = vpop.permute.xlu0 %1466  ;;  %v922_v14 = vld [vmem:[%s2180_s8 + $0x168] sm:$0xff] }
 0x29a   : > { %1650 = vst [vmem:[%s3220_s25 + $0x38] sm:$0xff] %v1618_v4  ;;  %v1588_v31 = vmul.f32 %v1467_v7, %v1396_v44  ;;  %v1368_v19 = vadd.f32 %v1336_v10, %v1112_v3  ;;  %v1338_v4 = vmul.f32 %v3155_v60, %v1146_v33  ;;  %v1114_v7 = vmul.f32 %v3022_v32, %v922_v14  ;;  %v1152_v33 = vld [vmem:[%s2180_s8 + $0x200] sm:$0xff] }
 0x29b   : > { %v1615_v39 = vadd.f32 %v1583_v21, %v3111_v27  ;;  %v1395_v27 = vld [vmem:[%s2180_s8 + $0xd0] sm:$0xff]  ;;  %v1402_v21 = vld [vmem:[%s2180_s8 + $0x178] sm:$0xff] }
 0x29c   : > { %v1620_v59 = vadd.f32 %v1588_v31, %v1364_v6  ;;  %v1452_v11 = vpop.permute.xlu1 %1451  ;;  %v924_v31 = vld [vmem:[%s2180_s8 + $0x198] sm:$0xff]  ;;  %v1370_v18 = vadd.f32 %v1338_v4, %v1114_v7  ;;  %v1154_v4 = vld [vmem:[%s2180_s8 + $0x230] sm:$0xff] }
 0x29d   : > { %1647 = vst [vmem:[%s3220_s25 + $0x20] sm:$0xff] %v1615_v39  ;;  %v1585_v51 = vmul.f32 %v1452_v11, %v1393_v50  ;;  %v1477_v63 = vpop.permute.xlu0 %1476  ;;  %v1340_v39 = vmul.f32 %v3162_v62, %v1148_v61  ;;  %v1116_v11 = vmul.f32 %v3030_v40, %v924_v31 }
 0x29e   : > { %1652 = vst [vmem:[%s3220_s25 + $0x48] sm:$0xff] %v1620_v59  ;;  %v1590_v49 = vmul.f32 %v1477_v63, %v1398_v8  ;;  %v1404_v59 = vld [vmem:[%s2180_s8 + $0x1a8] sm:$0xff] }
 0x29f   : > { %v1617_v24 = vadd.f32 %v1585_v51, %v3118_v26  ;;  %v1397_v26 = vld [vmem:[%s2180_s8 + $0x100] sm:$0xff]  ;;  %v926_v63 = vld [vmem:[%s2180_s8 + $0x1c8] sm:$0xff]  ;;  %v1372_v10 = vadd.f32 %v1340_v39, %v1116_v11 }
 0x2a0   : > { %v1622_v36 = vadd.f32 %v1590_v49, %v1366_v42  ;;  %v1462_v30 = vpop.permute.xlu1 %1461  ;;  %v1342_v49 = vmul.f32 %v3169_v15, %v1150_v1 }
 0x2a1   : > { %1649 = vst [vmem:[%s3220_s25 + $0x30] sm:$0xff] %v1617_v24  ;;  %v1587_v56 = vmul.f32 %v1462_v30, %v1395_v27  ;;  %v1487_v44 = vpop.permute.xlu0 %1486  ;;  %v1406_v24 = vld [vmem:[%s2180_s8 + $0x1d8] sm:$0xff] }
 0x2a2   : > { %1654 = vst [vmem:[%s3220_s25 + $0x58] sm:$0xff] %v1622_v36  ;;  %v1592_v58 = vmul.f32 %v1487_v44, %v1400_v28  ;;  %v1118_v28 = vmul.f32 %v3038_v17, %v926_v63  ;;  %v928_v30 = vld [vmem:[%s2180_s8 + $0x1f8] sm:$0xff]  ;;  %v1344_v44 = vmul.f32 %v3176_v16, %v1152_v33 }
 0x2a3   : > { %v1619_v46 = vadd.f32 %v1587_v56, %v3125_v5  ;;  %v1399_v5 = vld [vmem:[%s2180_s8 + $0x130] sm:$0xff] }
 0x2a4   : > { %v1624_v6 = vadd.f32 %v1592_v58, %v1368_v19  ;;  %v1472_v0 = vpop.permute.xlu1 %1471  ;;  %v1374_v56 = vadd.f32 %v1342_v49, %v1118_v28  ;;  %v1408_v58 = vld [vmem:[%s2180_s8 + $0x208] sm:$0xff] }
 0x2a5   : > { %1651 = vst [vmem:[%s3220_s25 + $0x40] sm:$0xff] %v1619_v46  ;;  %v1589_v60 = vmul.f32 %v1472_v0, %v1397_v26  ;;  %v1497_v50 = vpop.permute.xlu0 %1496  ;;  %v1120_v26 = vmul.f32 %v3046_v23, %v928_v30  ;;  %v1346_v0 = vmul.f32 %v3183_v22, %v1154_v4  ;;  %v936_v30 = vld [vmem:[%s2180_s8 + $0x2b8] sm:$0xff] }
 0x2a6   : > { %1656 = vst [vmem:[%s3220_s25 + $0x68] sm:$0xff] %v1624_v6  ;;  %v1594_v8 = vmul.f32 %v1497_v50, %v1402_v21  ;;  %v930_v21 = vld [vmem:[%s2180_s8 + $0x228] sm:$0xff]  ;;  %v1410_v50 = vld [vmem:[%s2180_s8 + $0x238] sm:$0xff]  ;;  %v1128_v4 = vmul.f32 %v3078_v52, %v936_v30 }
 0x2a7   : > { %v1621_v32 = vadd.f32 %v1589_v60, %v3132_v35  ;;  %v1401_v35 = vld [vmem:[%s2180_s8 + $0x160] sm:$0xff]  ;;  %v1376_v6 = vadd.f32 %v1344_v44, %v1120_v26  ;;  %v938_v26 = vld [vmem:[%s2180_s8 + $0x2e8] sm:$0xff] }
 0x2a8   : > { %v1626_v57 = vadd.f32 %v1594_v8, %v1370_v18  ;;  %v1482_v51 = vpop.permute.xlu1 %1481  ;;  %v1156_v60 = vld [vmem:[%s2180_s8 + $0x260] sm:$0xff]  ;;  %v1122_v18 = vmul.f32 %v3054_v45, %v930_v21  ;;  %v1130_v52 = vmul.f32 %v3086_v55, %v938_v26 }
 0x2a9   : > { %1653 = vst [vmem:[%s3220_s25 + $0x50] sm:$0xff] %v1621_v32  ;;  %v1591_v62 = vmul.f32 %v1482_v51, %v1399_v5  ;;  %v1507_v42 = vpop.permute.xlu0 %1506  ;;  %v932_v5 = vld [vmem:[%s2180_s8 + $0x258] sm:$0xff]  ;;  %v1412_v51 = vld [vmem:[%s2180_s8 + $0x268] sm:$0xff]  ;;  %v1417_v55 = vld [vmem:[%s2180_s8 + $0x2e0] sm:$0xff] }
 0x2aa   : > { %1658 = vst [vmem:[%s3220_s25 + $0x78] sm:$0xff] %v1626_v57  ;;  %v1596_v27 = vmul.f32 %v1507_v42, %v1404_v59  ;;  %v1378_v32 = vadd.f32 %v1346_v0, %v1122_v18  ;;  %v1348_v59 = vmul.f32 %v3190_v47, %v1156_v60  ;;  %v1158_v57 = vld [vmem:[%s2180_s8 + $0x290] sm:$0xff]  ;;  %v1124_v63 = vmul.f32 %v3062_v48, %v932_v5 }
 0x2ab   : > { %v1623_v40 = vadd.f32 %v1591_v62, %v3139_v38  ;;  %v1403_v38 = vld [vmem:[%s2180_s8 + $0x190] sm:$0xff] }
 0x2ac   : > { %v1628_v3 = vadd.f32 %v1596_v27, %v1372_v10  ;;  %v1492_v36 = vpop.permute.xlu1 %1491  ;;  %v934_v10 = vld [vmem:[%s2180_s8 + $0x288] sm:$0xff]  ;;  %v1380_v27 = vadd.f32 %v1348_v59, %v1124_v63 }
 0x2ad   : > { %1655 = vst [vmem:[%s3220_s25 + $0x60] sm:$0xff] %v1623_v40  ;;  %v1593_v15 = vmul.f32 %v1492_v36, %v1401_v35  ;;  %v1517_v14 = vpop.permute.xlu0 %1516  ;;  %v1350_v35 = vmul.f32 %v3198_v29, %v1158_v57  ;;  %v1160_v40 = vld [vmem:[%s2180_s8 + $0x2c0] sm:$0xff]  ;;  %v1126_v28 = vmul.f32 %v3070_v37, %v934_v10 }
 0x2ae   : > { %1660 = vst [vmem:[%s3220_s25 + $0x88] sm:$0xff] %v1628_v3  ;;  %v1598_v19 = vmul.f32 %v1517_v14, %v1406_v24  ;;  %v1414_v24 = vld [vmem:[%s2180_s8 + $0x298] sm:$0xff] }
 0x2af   : > { %v1625_v17 = vadd.f32 %v1593_v15, %v3146_v53  ;;  %v1405_v53 = vld [vmem:[%s2180_s8 + $0x1c0] sm:$0xff]  ;;  %v1382_v14 = vadd.f32 %v1350_v35, %v1126_v28 }
 0x2b0   : > { %v1630_v61 = vadd.f32 %v1598_v19, %v1374_v56  ;;  %v1502_v46 = vpop.permute.xlu1 %1501  ;;  %v1352_v56 = vmul.f32 %v3206_v41, %v1160_v40  ;;  %v1162_v19 = vld [vmem:[%s2180_s8 + $0x2f0] sm:$0xff] }
 0x2b1   : > { %1657 = vst [vmem:[%s3220_s25 + $0x70] sm:$0xff] %v1625_v17  ;;  %v1595_v16 = vmul.f32 %v1502_v46, %v1403_v38  ;;  %v1527_v7 = vpop.permute.xlu0 %1526  ;;  %v1416_v38 = vld [vmem:[%s2180_s8 + $0x2c8] sm:$0xff]  ;;  %v1354_v21 = vmul.f32 %v3214_v9, %v1162_v19 }
 0x2b2   : > { %1662 = vst [vmem:[%s3220_s25 + $0x98] sm:$0xff] %v1630_v61  ;;  %v1600_v31 = vmul.f32 %v1527_v7, %v1408_v58  ;;  %v1384_v46 = vadd.f32 %v1352_v56, %v1128_v4  ;;  %v1413_v7 = vld [vmem:[%s2180_s8 + $0x280] sm:$0xff] }
 0x2b3   : > { %v1627_v23 = vadd.f32 %v1595_v16, %v3153_v34  ;;  %v1407_v34 = vld [vmem:[%s2180_s8 + $0x1f0] sm:$0xff] }
 0x2b4   : > { %v1632_v39 = vadd.f32 %v1600_v31, %v1376_v6  ;;  %v1512_v8 = vpop.permute.xlu1 %1511  ;;  %v1418_v6 = vld [vmem:[%s2180_s8 + $0x2f8] sm:$0xff] }
 0x2b5   : > { %1659 = vst [vmem:[%s3220_s25 + $0x80] sm:$0xff] %v1627_v23  ;;  %v1597_v22 = vmul.f32 %v1512_v8, %v1405_v53  ;;  %v1537_v1 = vpop.permute.xlu0 %1536  ;;  %v1386_v23 = vadd.f32 %v1354_v21, %v1130_v52 }
 0x2b6   : > { %1664 = vst [vmem:[%s3220_s25 + $0xa8] sm:$0xff] %v1632_v39  ;;  %v1602_v11 = vmul.f32 %v1537_v1, %v1410_v50  ;;  %v1415_v50 = vld [vmem:[%s2180_s8 + $0x2b0] sm:$0xff] }
 0x2b7   : > { %v1629_v45 = vadd.f32 %v1597_v22, %v3160_v25  ;;  %v1409_v25 = vld [vmem:[%s2180_s8 + $0x220] sm:$0xff] }
 0x2b8   : > { %v1634_v62 = vadd.f32 %v1602_v11, %v1378_v32  ;;  %v1522_v42 = vpop.permute.xlu1 %1521 }
 0x2b9   : > { %1661 = vst [vmem:[%s3220_s25 + $0x90] sm:$0xff] %v1629_v45  ;;  %v1599_v47 = vmul.f32 %v1522_v42, %v1407_v34  ;;  %v1547_v49 = vpop.permute.xlu0 %1546 }
 0x2ba   : > { %1666 = vst [vmem:[%s3220_s25 + $0xb8] sm:$0xff] %v1634_v62  ;;  %v1604_v33 = vmul.f32 %v1547_v49, %v1412_v51 }
 0x2bb   : > { %v1631_v48 = vadd.f32 %v1599_v47, %v3167_v20  ;;  %v1411_v20 = vld [vmem:[%s2180_s8 + $0x250] sm:$0xff] }
 0x2bc   : > { %v1636_v3 = vadd.f32 %v1604_v33, %v1380_v27  ;;  %v1532_v36 = vpop.permute.xlu1 %1531 }
 0x2bd   : > { %1663 = vst [vmem:[%s3220_s25 + $0xa0] sm:$0xff] %v1631_v48  ;;  %v1601_v29 = vmul.f32 %v1532_v36, %v1409_v25  ;;  %v1557_v15 = vpop.permute.xlu0 %1556 }
 0x2be   : > { %1668 = vst [vmem:[%s3220_s25 + $0xc8] sm:$0xff] %v1636_v3  ;;  %v1606_v44 = vmul.f32 %v1557_v15, %v1414_v24 }
 0x2bf   : > { %v1633_v37 = vadd.f32 %v1601_v29, %v3174_v13 }
 0x2c0   : > { %v1638_v17 = vadd.f32 %v1606_v44, %v1382_v14  ;;  %v1542_v58 = vpop.permute.xlu1 %1541 }
 0x2c1   : > { %1665 = vst [vmem:[%s3220_s25 + $0xb0] sm:$0xff] %v1633_v37  ;;  %v1603_v61 = vmul.f32 %v1542_v58, %v1411_v20  ;;  %v1567_v41 = vpop.permute.xlu0 %1566 }
 0x2c2   : > { %1670 = vst [vmem:[%s3220_s25 + $0xd8] sm:$0xff] %v1638_v17  ;;  %v1608_v16 = vmul.f32 %v1567_v41, %v1416_v38 }
 0x2c3   : > { %v1635_v13 = vadd.f32 %v1603_v61, %v3181_v2 }
 0x2c4   : > { %v1640_v0 = vadd.f32 %v1608_v16, %v1384_v46  ;;  %v1552_v31 = vpop.permute.xlu1 %1551 }
 0x2c5   : > { %1667 = vst [vmem:[%s3220_s25 + $0xc0] sm:$0xff] %v1635_v13  ;;  %v1605_v53 = vmul.f32 %v1552_v31, %v1413_v7  ;;  %v1577_v60 = vpop.permute.xlu0 %1576 }
 0x2c6   : > { %1672 = vst [vmem:[%s3220_s25 + $0xe8] sm:$0xff] %v1640_v0  ;;  %v1610_v9 = vmul.f32 %v1577_v60, %v1418_v6 }
 0x2c7   : > { %v1637_v18 = vadd.f32 %v1605_v53, %v3188_v43 }
 0x2c8   : > { %v1642_v2 = vadd.f32 %v1610_v9, %v1386_v23  ;;  %v1562_v39 = vpop.permute.xlu1 %1561 }
 0x2c9   : > { %1669 = vst [vmem:[%s3220_s25 + $0xd0] sm:$0xff] %v1637_v18  ;;  %v1607_v8 = vmul.f32 %v1562_v39, %v1415_v50 }
 0x2ca   : > { %1674 = vst [vmem:[%s3220_s25 + $0xf8] sm:$0xff] %v1642_v2 }
 0x2cb   : > { %v1639_v5 = vadd.f32 %v1607_v8, %v3196_v54 }
 0x2cc   : > { %v1572_v22 = vpop.permute.xlu1 %1571 }
 0x2cd   : > { %1671 = vst [vmem:[%s3220_s25 + $0xe0] sm:$0xff] %v1639_v5  ;;  %v1609_v1 = vmul.f32 %v1572_v22, %v1417_v55  ;;  %1682 = sbr.rel (!%p2123_p9) target bundleno = 749 (0x2ed), region = 36 }
 0x2cf   : > { %v1641_v32 = vadd.f32 %v1609_v1, %v3204_v12 }
 0x2d1   : > { %1673 = vst [vmem:[%s3220_s25 + $0xf0] sm:$0xff] %v1641_v32 }
 0x2d2   : > { %s3521_s29 = smov (!%p1685_p6, %s1684_s29), 32 }
 0x2d3   : > { %s3357_s30 = sshll.u32 %s3521_s29, 7 }
 0x2d4   : > { %s1689_s5 = ssub.s32 4096, %s3357_s30 }
 0x2d5   : > { %1690 = vsyncadd %s1676_s27, %s1689_s5  ;;  %p1797_p13 = scmp.ne.s32.totalorder %s3357_s30, 0  ;;  %s1803_s7 = sshll.u32 %s2100_s13, 12 }
 0x2d6   : > { %s3367_s28 = scalar_lea.hbm %s3416_s2, %s1803_s7  ;;  %s1695_s26 = sshll.u32 %s3220_s25, 4  ;;  %s3370_s26 = int_to_ptr.vmem [resolvable:$true] %s1695_s26 }
 0x2d7   : > { %s1985_s3 = scalar_lea.vmem %s3370_s26, %s3357_s30  ;;  %s2061_s6 = smov [#allocation5]  }
 0x2d8   : > { %p1986_p9 = scmp.ne.s32.totalorder %s3370_s26, %s1985_s3  ;;  %s1989_s14 = sshll.u32 %s2061_s6, 4  ;;  %s1990_s14 = int_to_ptr.vmem [resolvable:$false] %s1989_s14 }
 0x2d9   : > { %s1991_s13 = scalar_lea.vmem %s1990_s14, 8192  ;;  %p1992_p11 = scmp.lt.s32.totalorder %s3370_s26, %s1990_s14 }
 0x2da   : > { %p1987_p7 = pnand %p1986_p9, %p1797_p13  ;;  %p1993_p12 = scmp.lt.s32.totalorder %s1991_s13, %s1985_s3 }
 0x2dc   : > { %p1988_p8 = pneg %p1987_p7  ;;  %p1994_p0 = por %p1993_p12, %p1992_p11 }
 0x2de   : > { %p1995_p1 = pnand %p1994_p0, %p1988_p8 }
 0x2e0   : > { %1998 = shalt.err (!%p1995_p1)
}
 0x2e1   : > { %s1999_s16 = scalar_lea.hbm %s3367_s28, %s3357_s30  ;;  %s2003_s22 = scalar_lea.hbm %s3416_s2, 16000 }
 0x2e2   : > { %p2000_p3 = scmp.ne.s32.totalorder %s3367_s28, %s1999_s16  ;;  %p2004_p5 = scmp.lt.s32.totalorder %s3367_s28, %s3416_s2 }
 0x2e3   : > { %p2005_p10 = scmp.lt.s32.totalorder %s2003_s22, %s1999_s16 }
 0x2e4   : > { %p2001_p2 = pnand %p2000_p3, %p1797_p13 }
 0x2e5   : > { %p2006_p6 = por %p2005_p10, %p2004_p5 }
 0x2e6   : > { %p2002_p4 = pneg %p2001_p2 }
 0x2e8   : > { %p2007_p9 = pnand %p2006_p6, %p2002_p4 }
 0x2ea   : > { %2010 = shalt.err (!%p2007_p9)
}
 0x2eb   : > { %s2062_s25 = smov 128   ;;  %s2063_s29 = smov 8  }
 0x2ec   : > { %1701 = dma.vmem_to_hbm [thread:$0]  (%p1797_p13), %s3370_s26, %s3357_s30, %s3367_s28, %s1676_s27, %s2062_s25, %s2062_s25, %s2063_s29  }
 0x2ed PF: > { %p1813_p7 = scmp.ge.s32.totalorder %s2049_s12, 2  ;;  %s1710_s5 = sand.u32 1, %s2037_s9  }
 0x2ee   : > { %p3513_p8 = scmp.ne.s32.totalorder %s3436_s21, 0  ;;  %s1711_s7 = scalar_lea.sflag [#allocation4], %s1710_s5 }
 0x2f0   : > { %p1810_p11 = pnand %p1813_p7, %p3513_p8 }
 0x2f2   : > { %p1811_p12 = pneg %p1810_p11 }
 0x2f4   : > { %2032 = dma.done.wait (%p1811_p12), %s1711_s7, 4096  }
 0x2f5   : > { %2034 = vsyncadd (%p1811_p12), %s1711_s7, 4294963200  ;;  %p15_p0 = scmp.ge.s32.totalorder %s2104_s15, 6   ;;  %s3514_s9 = smov %s2041_s10 }
 0x2f6   : > { %s3515_s10 = smov %s2045_s11  ;;  %s3516_s11 = smov %s2116_s18 }
 0x2f7   : > { %s3517_s12 = smov %s2104_s15  ;;  %17 = sbr.rel (!%p15_p0) target bundleno = 5 (0x5), region = 76 }
 0x2fc   :  { %1716 = vsyncpa [#allocation3], 1 }
 0x2fd   :  { %1718 = vsyncpa [#allocation3 + $0x1], 1 }
 0x2fe   :  { %1719 = vsyncpa [#allocation4], 1 }
 0x2ff   :  { %1721 = vsyncpa [#allocation4 + $0x1], 1 }

</bundles_post_ra>
